<compile_context>
chip_gen: v7x
topology: tpu7x:2x2x1
jax: 0.10.0
libtpu: 0.0.40
codegen_flags: <defaults>
</compile_context>

<pallas_src>
import jax
import jax.numpy as jnp
from jax.experimental import pallas as pl
from jax.experimental.pallas import tpu as pltpu


def _mlp_kernel(x_ref, w1_ref, b1_ref, w2_ref, b2_ref, w3_ref, b3_ref, o_ref):
    hi = jax.lax.Precision.HIGHEST
    # Layer 1: (B, D_in) @ (D_in, H1) + b1 -> ReLU
    h = jnp.dot(x_ref[...], w1_ref[...],
                preferred_element_type=jnp.float32, precision=hi)
    h = jnp.maximum(h + b1_ref[...], 0.0)
    # Layer 2: (B, H1) @ (H1, H2) + b2 -> ReLU
    h = jnp.dot(h, w2_ref[...],
                preferred_element_type=jnp.float32, precision=hi)
    h = jnp.maximum(h + b2_ref[...], 0.0)
    # Layer 3 (output_activation=None): (B, H2) @ (H2, D_out) + b3
    h = jnp.dot(h, w3_ref[...],
                preferred_element_type=jnp.float32, precision=hi)
    o_ref[...] = (h + b3_ref[...]).astype(o_ref.dtype)


@jax.jit
def mlp_forward(x, params):
    """Fused forward pass: one grid-less pallas_call for the whole MLP."""
    (w1, b1), (w2, b2), (w3, b3) = params
    B = x.shape[0]
    out_dim = w3.shape[1]

    # Advisory cost hint for the XLA scheduler (shapes are static under jit).
    flops = 2 * B * (w1.shape[0] * w1.shape[1]
                     + w2.shape[0] * w2.shape[1]
                     + w3.shape[0] * w3.shape[1])
    bytes_accessed = (sum(int(a.size) * a.dtype.itemsize
                          for a in (x, w1, b1, w2, b2, w3, b3))
                      + B * out_dim * x.dtype.itemsize)

    vmem = pl.BlockSpec(memory_space=pltpu.MemorySpace.VMEM)
    return pl.pallas_call(
        _mlp_kernel,
        out_shape=jax.ShapeDtypeStruct((B, out_dim), x.dtype),
        in_specs=[vmem] * 7,
        out_specs=vmem,
        cost_estimate=pl.CostEstimate(
            flops=flops, transcendentals=0, bytes_accessed=bytes_accessed),
    )(x, w1, b1, w2, b2, w3, b3)


def init_mlp_params(key, input_dim, output_dim, layers_size):
    """Deterministic init matching nn.Linear's default U(-1/sqrt(fan_in), +1/sqrt(fan_in))."""
    dims = [input_dim] + list(layers_size) + [output_dim]
    params = []
    for d_in, d_out in zip(dims[:-1], dims[1:]):
        key, kw, kb = jax.random.split(key, 3)
        bound = 1.0 / jnp.sqrt(jnp.float32(d_in))
        w = jax.random.uniform(kw, (d_in, d_out), jnp.float32, -bound, bound)
        b = jax.random.uniform(kb, (1, d_out), jnp.float32, -bound, bound)
        params.append((w, b))
    return params


def mlp_reference(x, params):
    n = len(params)
    h = x
    hi = jax.lax.Precision.HIGHEST
    for i, (w, b) in enumerate(params):
        h = jnp.dot(h, w, precision=hi) + b
        if i < n - 1:
            h = jnp.maximum(h, 0.0)
    return h


if __name__ == "__main__":
    key = jax.random.PRNGKey(0)
    batch = 8
    input_dim = 32
    output_dim = 16
    layers_size = [256, 256]  # module default

    kx, kp = jax.random.split(key)
    x = jax.random.normal(kx, (batch, input_dim), jnp.float32)
    params = init_mlp_params(kp, input_dim, output_dim, layers_size)

    out = mlp_forward(x, params)
    out = jax.block_until_ready(out)

    ref = mlp_reference(x, params)
    assert out.shape == (batch, output_dim)
    assert jnp.allclose(out, ref, atol=1e-4, rtol=1e-4)

    print("KERNEL_OK")
</pallas_src>

<mosaic_0001>
module attributes {stable_mosaic.version = 11 : i64} {
  func.func @_mlp_kernel(%arg0: memref<8x32xf32, #tpu.memory_space<vmem>>, %arg1: memref<32x256xf32, #tpu.memory_space<vmem>>, %arg2: memref<1x256xf32, #tpu.memory_space<vmem>>, %arg3: memref<256x256xf32, #tpu.memory_space<vmem>>, %arg4: memref<1x256xf32, #tpu.memory_space<vmem>>, %arg5: memref<256x16xf32, #tpu.memory_space<vmem>>, %arg6: memref<1x16xf32, #tpu.memory_space<vmem>>, %arg7: memref<8x16xf32, #tpu.memory_space<vmem>>) attributes {dimension_semantics = [], scalar_prefetch = 0 : i64, scratch_operands = 0 : i64, tpu.core_type = #tpu.core_type<tc>} {
    %c0 = arith.constant 0 : index
    %c0_0 = arith.constant 0 : index
    %0 = vector.load %arg0[%c0, %c0_0] : memref<8x32xf32, #tpu.memory_space<vmem>>, vector<8x32xf32>
    %c0_1 = arith.constant 0 : index
    %c0_2 = arith.constant 0 : index
    %1 = vector.load %arg1[%c0_1, %c0_2] : memref<32x256xf32, #tpu.memory_space<vmem>>, vector<32x256xf32>
    %cst = arith.constant dense<0.000000e+00> : vector<8x256xf32>
    %2 = tpu.matmul %0, %1, %cst {dimension_numbers = #tpu.dot_dimension_numbers<[1], [0], [0], [1], [0, 0, 1, 1], [], []>, precision = #tpu.contract_precision<fp32>} : vector<8x32xf32>, vector<32x256xf32>, vector<8x256xf32> -> vector<8x256xf32>
    %c0_3 = arith.constant 0 : index
    %c0_4 = arith.constant 0 : index
    %3 = vector.load %arg2[%c0_3, %c0_4] : memref<1x256xf32, #tpu.memory_space<vmem>>, vector<1x256xf32>
    %4 = vector.broadcast %3 : vector<1x256xf32> to vector<8x256xf32>
    %5 = arith.addf %2, %4 : vector<8x256xf32>
    %cst_5 = arith.constant 0.000000e+00 : f32
    %6 = vector.broadcast %cst_5 : f32 to vector<8x256xf32>
    %7 = arith.maximumf %5, %6 : vector<8x256xf32>
    %c0_6 = arith.constant 0 : index
    %c0_7 = arith.constant 0 : index
    %8 = vector.load %arg3[%c0_6, %c0_7] : memref<256x256xf32, #tpu.memory_space<vmem>>, vector<256x256xf32>
    %cst_8 = arith.constant dense<0.000000e+00> : vector<8x256xf32>
    %9 = tpu.matmul %7, %8, %cst_8 {dimension_numbers = #tpu.dot_dimension_numbers<[1], [0], [0], [1], [0, 0, 1, 1], [], []>, precision = #tpu.contract_precision<fp32>} : vector<8x256xf32>, vector<256x256xf32>, vector<8x256xf32> -> vector<8x256xf32>
    %c0_9 = arith.constant 0 : index
    %c0_10 = arith.constant 0 : index
    %10 = vector.load %arg4[%c0_9, %c0_10] : memref<1x256xf32, #tpu.memory_space<vmem>>, vector<1x256xf32>
    %11 = vector.broadcast %10 : vector<1x256xf32> to vector<8x256xf32>
    %12 = arith.addf %9, %11 : vector<8x256xf32>
    %cst_11 = arith.constant 0.000000e+00 : f32
    %13 = vector.broadcast %cst_11 : f32 to vector<8x256xf32>
    %14 = arith.maximumf %12, %13 : vector<8x256xf32>
    %c0_12 = arith.constant 0 : index
    %c0_13 = arith.constant 0 : index
    %15 = vector.load %arg5[%c0_12, %c0_13] : memref<256x16xf32, #tpu.memory_space<vmem>>, vector<256x16xf32>
    %cst_14 = arith.constant dense<0.000000e+00> : vector<8x16xf32>
    %16 = tpu.matmul %14, %15, %cst_14 {dimension_numbers = #tpu.dot_dimension_numbers<[1], [0], [0], [1], [0, 0, 1, 1], [], []>, precision = #tpu.contract_precision<fp32>} : vector<8x256xf32>, vector<256x16xf32>, vector<8x16xf32> -> vector<8x16xf32>
    %c0_15 = arith.constant 0 : index
    %c0_16 = arith.constant 0 : index
    %17 = vector.load %arg6[%c0_15, %c0_16] : memref<1x16xf32, #tpu.memory_space<vmem>>, vector<1x16xf32>
    %18 = vector.broadcast %17 : vector<1x16xf32> to vector<8x16xf32>
    %19 = arith.addf %16, %18 : vector<8x16xf32>
    %c0_17 = arith.constant 0 : index
    %c0_18 = arith.constant 0 : index
    %20 = vector.load %arg7[%c0_17, %c0_18] : memref<8x16xf32, #tpu.memory_space<vmem>>, vector<8x16xf32>
    tpu.vector_store %arg7[%c0_17, %c0_18], %19 {strides = array<i32>} : memref<8x16xf32, #tpu.memory_space<vmem>>, vector<8x16xf32>,
    return
  }
}

</mosaic_0001>

<bundles_post_ra>
// kernel: mlp_forward.1
= control target key start
LH: loop header
LB: loop body
LE: loop exit
PB: predicated region body
PF: predicated region fallthrough
CT: control target
= control target key end

     0   :  { %12 = vsyncpa [#allocation3], 0  ;;  %s5770_s0 = inlined_call_operand.vmem [shape: f32[8,32], index: 0, kind: input, shape index: {}]   ;;  %s5771_s1 = inlined_call_operand.vmem [shape: f32[32,256], index: 1, kind: input, shape index: {}]   ;;  %s5772_s2 = inlined_call_operand.vmem [shape: f32[1,256], index: 2, kind: input, shape index: {}]   ;;  %s5773_s3 = inlined_call_operand.hbm [shape: f32[256,256], index: 3, kind: input, shape index: {}]   ;;  %s5774_s4 = inlined_call_operand.vmem [shape: f32[1,256], index: 4, kind: input, shape index: {}]   ;;  %s5775_s5 = inlined_call_operand.vmem [shape: f32[256,16], index: 5, kind: input, shape index: {}]   ;;  %s5776_s6 = inlined_call_operand.vmem [shape: f32[1,16], index: 6, kind: input, shape index: {}]   ;;  %s5777_s7 = inlined_call_operand.hbm [shape: f32[8,16], index: 7, kind: output, shape index: {}]  }
   0x1   :  { %13 = vsyncpa [#allocation4], 0  ;;  %s3803_s24 = smov [#allocation2]   ;;  %s3755_s28 = scalar_lea.hbm %s5773_s3, 8192 }
   0x2   :  { %s25_s25 = sshll.u32 %s3803_s24, 4  ;;  %p3756_p0 = scmp.ne.s32.totalorder %s5773_s3, %s3755_s28  ;;  %s26_s25 = int_to_ptr.vmem [resolvable:$true] %s25_s25 }
   0x3   :  { %p3759_p1 = scmp.lt.u32.totalorder %s3755_s28, %s5773_s3 }
   0x5   :  { %p3761_p2 = pnand %p3759_p1, %p3756_p0 }
   0x7   :  { %3764 = shalt.err (!%p3761_p2)
}
   0x8   :  { %s3765_s10 = scalar_lea.vmem %s26_s25, 8192  ;;  %p3770_p4 = scmp.lt.s32.totalorder %s26_s25, %s26_s25 }
   0x9   :  { %p3766_p3 = scmp.ne.s32.totalorder %s26_s25, %s3765_s10  ;;  %p3771_p5 = scmp.lt.s32.totalorder %s3765_s10, %s3765_s10 }
   0xb   :  { %p3772_p6 = por %p3771_p5, %p3770_p4 }
   0xd   :  { %p3773_p7 = pnand %p3772_p6, %p3766_p3 }
   0xf   :  { %3776 = shalt.err (!%p3773_p7)
}
  0x10   :  { %s3804_s11 = smov 256   ;;  %s3805_s12 = smov 16  }
  0x11   :  { %31 = dma.hbm_to_vmem [thread:$0]  %s5773_s3, 8192, %s26_s25, [#allocation3], %s3804_s11, %s3804_s11, %s3805_s12  }
  0x12   :  { %3799 = dma.done.wait [#allocation3], 8192  }
  0x13   :  { %3800 = vsyncadd [#allocation3], 4294959104  ;;  %v3806_v0 = vmov 0.0   ;;  %v43_v1 = vld [vmem:[%s5771_s1 + $0x8] sm:$0xff]  ;;  %v45_v2 = vld [vmem:[%s5771_s1 + $0x18] sm:$0xff]  ;;  %vm62_vm0 = vcmask 261120  }
  0x14   :  { %138 = vmatprep.mubr.f32.mxu0 %v3806_v0  ;;  %v42_v3 = vld [vmem:[%s5771_s1] sm:$0xff]  ;;  %v66_v4 = vand.u32 4294901760, %v43_v1  ;;  %v70_v5 = vand.u32 4294901760, %v45_v2  ;;  %v44_v6 = vld [vmem:[%s5771_s1 + $0x10] sm:$0xff]  ;;  %v47_v8 = vld [vmem:[%s5771_s1 + $0x28] sm:$0xff]  ;;  %vm2874_vm1 = vcmask 130048  }
  0x15   :  { %v68_v7 = vand.u32 4294901760, %v42_v3  ;;  %v49_v9 = vld [vmem:[%s5771_s1 + $0x38] sm:$0xff]  ;;  %v72_v10 = vand.u32 4294901760, %v44_v6  ;;  %v74_v11 = vand.u32 4294901760, %v47_v8  ;;  %v46_v13 = vld [vmem:[%s5771_s1 + $0x20] sm:$0xff]  ;;  %v48_v14 = vld [vmem:[%s5771_s1 + $0x30] sm:$0xff] }
  0x16   :  { %v78_v12 = vand.u32 4294901760, %v49_v9  ;;  %v41_v15 = vld [vmem:[%s5770_s0] sm:$0xff]  ;;  %v3888_v16 = vpack.c.bf16 %v70_v5, %v66_v4  ;;  %v3890_v17 = vsub.f32 %v43_v1, %v66_v4  ;;  %v3892_v18 = vsub.f32 %v45_v2, %v70_v5  ;;  %v3943_v60 = vld [vmem:[#allocation2 + $0x8] sm:$0xff]  ;;  %v3945_v61 = vld [vmem:[#allocation2 + $0x18] sm:$0xff] }
  0x17   :  { %v3894_v19 = vsub.f32 %v42_v3, %v68_v7  ;;  %v3896_v20 = vpack.c.bf16 %v72_v10, %v68_v7  ;;  %v3898_v21 = vsub.f32 %v44_v6, %v72_v10  ;;  %v3902_v23 = vsub.f32 %v47_v8, %v74_v11  ;;  %v3952_v3 = vld [vmem:[#allocation2] sm:$0xff]  ;;  %v3954_v4 = vld [vmem:[#allocation2 + $0x10] sm:$0xff]  ;;  %v3956_v5 = vld [vmem:[#allocation2 + $0x28] sm:$0xff] }
  0x18   :  { %v3900_v22 = vpack.c.bf16 %v78_v12, %v74_v11  ;;  %3103 = vmatprep.subr.bf16.mxu0 %v3888_v16  ;;  %v3905_v24 = vsub.f32 %v49_v9, %v78_v12  ;;  %v76_v25 = vand.u32 4294901760, %v46_v13  ;;  %v80_v26 = vand.u32 4294901760, %v48_v14  ;;  %v3964_v10 = vld [vmem:[#allocation2 + $0x38] sm:$0xff]  ;;  %v3966_v11 = vld [vmem:[#allocation2 + $0x20] sm:$0xff] }
  0x19   :  { %v64_v27 = vsel %vm62_vm0, %v41_v15, 0  ;;  %3105 = vmatpush1.bf16.msra.mxu0 %v3896_v20  ;;  %v152_v29 = vand.u32 4294901760, %v3890_v17  ;;  %v164_v30 = vand.u32 4294901760, %v3892_v18  ;;  %v158_v31 = vand.u32 4294901760, %v3894_v19 }
  0x1a   :  { %v3909_v28 = vand.u32 4294901760, %v64_v27  ;;  %3107 = vmatprep.subr.bf16.mxu0 %v3900_v22  ;;  %v3915_v32 = vpack.c.bf16 %v80_v26, %v76_v25  ;;  %v3917_v33 = vsub.f32 %v46_v13, %v76_v25  ;;  %v3919_v34 = vsub.f32 %v48_v14, %v80_v26 }
  0x1b   :  { %v170_v35 = vand.u32 4294901760, %v3898_v21  ;;  %v153_v37 = vsub.f32 %v3890_v17, %v152_v29  ;;  %v165_v38 = vsub.f32 %v3892_v18, %v164_v30  ;;  %v159_v39 = vsub.f32 %v3894_v19, %v158_v31 }
  0x1c   :  { %v3923_v36 = vsub.f32 %v64_v27, %v3909_v28  ;;  %v176_v41 = vand.u32 4294901760, %v3902_v23  ;;  %v188_v42 = vand.u32 4294901760, %v3905_v24  ;;  %v182_v43 = vand.u32 4294901760, %v3917_v33 }
  0x1d   :  { %v171_v40 = vsub.f32 %v3898_v21, %v170_v35  ;;  %3109 = vmatpush1.bf16.msra.mxu0 %v3915_v32  ;;  %v154_v45 = vand.u32 4294901760, %v153_v37  ;;  %v166_v46 = vand.u32 4294901760, %v165_v38  ;;  %v160_v47 = vand.u32 4294901760, %v159_v39 }
  0x1e   :  { %v141_v44 = vand.u32 4294901760, %v3923_v36  ;;  %v177_v49 = vsub.f32 %v3902_v23, %v176_v41  ;;  %v189_v50 = vsub.f32 %v3905_v24, %v188_v42  ;;  %v183_v51 = vsub.f32 %v3917_v33, %v182_v43 }
  0x1f   :  { %v172_v48 = vand.u32 4294901760, %v171_v40  ;;  %v3110_v53 = vpack.c.bf16 %v166_v46, %v154_v45  ;;  %v194_v54 = vand.u32 4294901760, %v3919_v34  ;;  %v3118_v55 = vpack.c.bf16 %v3892_v18, %v3890_v17 }
  0x20   :  { %v142_v52 = vsub.f32 %v3923_v36, %v141_v44  ;;  %v178_v57 = vand.u32 4294901760, %v177_v49  ;;  %v190_v58 = vand.u32 4294901760, %v189_v50  ;;  %v184_v59 = vand.u32 4294901760, %v183_v51 }
  0x21   :  { %v3112_v56 = vpack.c.bf16 %v172_v48, %v160_v47  ;;  %3111 = vmatprep.subr.bf16.mxu0 %v3110_v53  ;;  %v195_v63 = vsub.f32 %v3919_v34, %v194_v54  ;;  %v3120_v1 = vpack.c.bf16 %v3898_v21, %v3894_v19  ;;  %v3122_v2 = vpack.c.bf16 %v3905_v24, %v3902_v23  ;;  %v3978_v23 = vld [vmem:[#allocation2 + $0x30] sm:$0xff] }
  0x22   :  { %v143_v62 = vand.u32 4294901760, %v142_v52  ;;  %v3114_v6 = vpack.c.bf16 %v190_v58, %v178_v57  ;;  %v3124_v7 = vpack.c.bf16 %v3919_v34, %v3917_v33  ;;  %v3960_v8 = vpack.c.bf16 %v164_v30, %v152_v29 }
  0x23   :  { %v3962_v9 = vpack.c.bf16 %v170_v35, %v158_v31  ;;  %v196_v12 = vand.u32 4294901760, %v195_v63  ;;  %v3968_v13 = vpack.c.bf16 %v188_v42, %v176_v41  ;;  %v3970_v14 = vpack.c.bf16 %v194_v54, %v182_v43  ;;  %v4041_v54 = vld [vmem:[#allocation2 + $0x48] sm:$0xff] }
  0x24   :  { %144 = vmatmul.mubr.f32.vlgmr.msra.gmra.mrb[0].mxu0 %v143_v62  ;;  %v687_v15 = vand.u32 4294901760, %v3943_v60  ;;  %v691_v17 = vand.u32 4294901760, %v3945_v61  ;;  %v689_v18 = vand.u32 4294901760, %v3952_v3  ;;  %v693_v19 = vand.u32 4294901760, %v3954_v4 }
  0x25   :  { %3113 = vmatpush1.bf16.msra.mxu0 %v3112_v56  ;;  %254 = vmatprep.mubr.f32.mxu0 %v3806_v0  ;;  %v695_v21 = vand.u32 4294901760, %v3956_v5  ;;  %v3116_v24 = vpack.c.bf16 %v196_v12, %v184_v59  ;;  %v699_v26 = vand.u32 4294901760, %v3964_v10  ;;  %v697_v27 = vand.u32 4294901760, %v3966_v11  ;;  %v4051_v59 = vld [vmem:[#allocation2 + $0x58] sm:$0xff] }
  0x26   :  { %3115 = vmatprep.subr.bf16.mxu0 %v3114_v6  ;;  %v3981_v25 = vsub.f32 %v3943_v60, %v687_v15  ;;  %v3986_v29 = vsub.f32 %v3945_v61, %v691_v17  ;;  %v3991_v30 = vsub.f32 %v3952_v3, %v689_v18  ;;  %v3996_v31 = vsub.f32 %v3954_v4, %v693_v19  ;;  %v4054_v6 = vld [vmem:[#allocation2 + $0x40] sm:$0xff]  ;;  %v4101_v4 = vld [vmem:[#allocation2 + $0x70] sm:$0xff] }
  0x27   :  { %v4001_v35 = vsub.f32 %v3956_v5, %v695_v21  ;;  %v4007_v38 = vsub.f32 %v3964_v10, %v699_v26  ;;  %v701_v39 = vand.u32 4294901760, %v3978_v23  ;;  %v4013_v40 = vsub.f32 %v3966_v11, %v697_v27 }
  0x28   :  { %v5790_v37 = vand.u32 4294901760, %v3981_v25  ;;  %v5787_v41 = vand.u32 4294901760, %v3986_v29  ;;  %v5786_v42 = vand.u32 4294901760, %v3991_v30  ;;  %v5784_v43 = vand.u32 4294901760, %v3996_v31 }
  0x29   :  { %3117 = vmatpush1.bf16.msra.mxu0 %v3116_v24  ;;  %v5780_v45 = vand.u32 4294901760, %v4001_v35  ;;  %v5779_v47 = vand.u32 4294901760, %v4007_v38  ;;  %v5778_v48 = vand.u32 4294901760, %v4013_v40  ;;  %v4027_v49 = vsub.f32 %v3978_v23, %v701_v39 }
  0x2a   :  { %3119 = vmatprep.subr.bf16.mxu0 %v3118_v55  ;;  %v835_v46 = vsub.f32 %v3981_v25, %v5790_v37  ;;  %v847_v50 = vsub.f32 %v3986_v29, %v5787_v41  ;;  %v841_v51 = vsub.f32 %v3991_v30, %v5786_v42  ;;  %v853_v52 = vsub.f32 %v3996_v31, %v5784_v43  ;;  %v4162_v42 = vld [vmem:[#allocation2 + $0x98] sm:$0xff]  ;;  %v4174_v37 = vld [vmem:[#allocation2 + $0x80] sm:$0xff] }
  0x2b   :  { %v859_v53 = vsub.f32 %v4001_v35, %v5780_v45  ;;  %v871_v56 = vsub.f32 %v4007_v38, %v5779_v47  ;;  %v865_v57 = vsub.f32 %v4013_v40, %v5778_v48  ;;  %v5781_v58 = vand.u32 4294901760, %v4027_v49  ;;  %v4060_v47 = vld [vmem:[#allocation2 + $0x50] sm:$0xff] }
  0x2c   :  { %256 = vmatmul.mubr.f32.vlgmr.msra.gmra.mrb[0].mxu0 %v3909_v28  ;;  %v836_v55 = vand.u32 4294901760, %v835_v46  ;;  %v848_v60 = vand.u32 4294901760, %v847_v50  ;;  %v842_v61 = vand.u32 4294901760, %v841_v51  ;;  %v854_v62 = vand.u32 4294901760, %v853_v52 }
  0x2d   :  { %3121 = vmatpush1.bf16.msra.mxu0 %v3120_v1  ;;  %342 = vmatprep.mubr.f32.mxu0 %v3806_v0  ;;  %v860_v63 = vand.u32 4294901760, %v859_v53  ;;  %v872_v12 = vand.u32 4294901760, %v871_v56  ;;  %v866_v24 = vand.u32 4294901760, %v865_v57  ;;  %v877_v46 = vsub.f32 %v4027_v49, %v5781_v58  ;;  %v4062_v1 = vld [vmem:[#allocation2 + $0x68] sm:$0xff]  ;;  %v4067_v53 = vld [vmem:[#allocation2 + $0x78] sm:$0xff] }
  0x2e   :  { %3123 = vmatprep.subr.bf16.mxu0 %v3122_v2  ;;  %v703_v48 = vand.u32 4294901760, %v4041_v54  ;;  %v3214_v45 = vpack.c.bf16 %v848_v60, %v836_v55  ;;  %v3216_v50 = vpack.c.bf16 %v854_v62, %v842_v61  ;;  %v707_v51 = vand.u32 4294901760, %v4051_v59  ;;  %v4091_v61 = vld [vmem:[#allocation2 + $0x60] sm:$0xff] }
  0x2f   :  { %v4065_v52 = vpack.c.bf16 %v691_v17, %v687_v15  ;;  %v3218_v2 = vpack.c.bf16 %v872_v12, %v860_v63  ;;  %v878_v56 = vand.u32 4294901760, %v877_v46  ;;  %v705_v58 = vand.u32 4294901760, %v4054_v6 }
  0x30   :  { %v4072_v57 = vsub.f32 %v4041_v54, %v703_v48  ;;  %3215 = vmatprep.subr.bf16.mxu1 %v3214_v45  ;;  %v4081_v15 = vsub.f32 %v4051_v59, %v707_v51  ;;  %v709_v17 = vand.u32 4294901760, %v4060_v47  ;;  %v4088_v55 = vpack.c.bf16 %v693_v19, %v689_v18 }
  0x31   :  { %6073 = vst [vmem:[#allocation8_spill] sm:$0xff] %v4065_v52  ;;  %3125 = vmatpush1.bf16.msra.mxu0 %v3124_v7  ;;  %v5795_v60 = vand.u32 4294901760, %v4062_v1  ;;  %3217 = vmatpush1.bf16.msra.mxu1 %v3216_v50  ;;  %v3220_v33 = vpack.c.bf16 %v878_v56, %v866_v24  ;;  %v4098_v7 = vsub.f32 %v4054_v6, %v705_v58  ;;  %v5793_v3 = vand.u32 4294901760, %v4067_v53 }
  0x32   :  { %6074 = vst [vmem:[#allocation9_spill] sm:$0xff] %v4088_v55  ;;  %3127 = vmatprep.subr.bf16.mxu0 %v3888_v16  ;;  %v5783_v34 = vand.u32 4294901760, %v4072_v57  ;;  %3219 = vmatprep.subr.bf16.mxu1 %v3218_v2  ;;  %v5782_v18 = vand.u32 4294901760, %v4081_v15  ;;  %v4107_v19 = vsub.f32 %v4060_v47, %v709_v17  ;;  %v4118_v62 = vpack.c.bf16 %v699_v26, %v695_v21 }
  0x33   :  { %v4112_v45 = vsub.f32 %v4062_v1, %v5795_v60  ;;  %v5785_v12 = vand.u32 4294901760, %v4098_v7  ;;  %v4128_v24 = vsub.f32 %v4067_v53, %v5793_v3  ;;  %v5792_v46 = vand.u32 4294901760, %v4091_v61 }
  0x34   :  { %6075 = vst [vmem:[#allocation10_spill] sm:$0xff] %v4118_v62  ;;  %345 = vmatmul.mubr.f32.vlgmr.msra.gmra.mrb[0].mxu0 %v3923_v36  ;;  %v883_v63 = vsub.f32 %v4072_v57, %v5783_v34  ;;  %v895_v5 = vsub.f32 %v4081_v15, %v5782_v18  ;;  %v5788_v10 = vand.u32 4294901760, %v4107_v19  ;;  %v5791_v26 = vand.u32 4294901760, %v4101_v4 }
  0x35   :  { %3129 = vmatpush1.bf16.msra.mxu0 %v3896_v20  ;;  %423 = vmatprep.mubr.f32.mxu0 %v3806_v0  ;;  %v5789_v21 = vand.u32 4294901760, %v4112_v45  ;;  %v889_v2 = vsub.f32 %v4098_v7, %v5785_v12  ;;  %v5794_v56 = vand.u32 4294901760, %v4128_v24  ;;  %v4147_v18 = vsub.f32 %v4091_v61, %v5792_v46  ;;  %v4160_v12 = vld [vmem:[#allocation2 + $0x88] sm:$0xff] }
  0x36   :  { %3131 = vmatprep.subr.bf16.mxu0 %v3900_v22  ;;  %3221 = vmatpush1.bf16.msra.mxu1 %v3220_v33  ;;  %v884_v50 = vand.u32 4294901760, %v883_v63  ;;  %v896_v34 = vand.u32 4294901760, %v895_v5  ;;  %v901_v43 = vsub.f32 %v4107_v19, %v5788_v10  ;;  %v4158_v63 = vsub.f32 %v4101_v4, %v5791_v26 }
  0x37   :  { %v907_v33 = vsub.f32 %v4112_v45, %v5789_v21  ;;  %v890_v41 = vand.u32 4294901760, %v889_v2  ;;  %v919_v5 = vsub.f32 %v4128_v24, %v5794_v56  ;;  %v5799_v10 = vand.u32 4294901760, %v4147_v18 }
  0x38   :  { %v4172_v21 = vpack.c.bf16 %v701_v39, %v697_v27  ;;  %v3222_v26 = vpack.c.bf16 %v896_v34, %v884_v50  ;;  %v902_v46 = vand.u32 4294901760, %v901_v43  ;;  %v5798_v2 = vand.u32 4294901760, %v4158_v63  ;;  %v4184_v39 = vld [vmem:[#allocation2 + $0x90] sm:$0xff]  ;;  %v4196_v50 = vld [vmem:[#allocation2 + $0xa8] sm:$0xff] }
  0x39   :  { %3133 = vmatpush1.bf16.msra.mxu0 %v3915_v32  ;;  %v908_v3 = vand.u32 4294901760, %v907_v33  ;;  %v920_v56 = vand.u32 4294901760, %v919_v5  ;;  %v913_v11 = vsub.f32 %v4147_v18, %v5799_v10  ;;  %v719_v23 = vand.u32 4294901760, %v4160_v12  ;;  %v4198_v33 = vld [vmem:[#allocation2 + $0xb8] sm:$0xff]  ;;  %v4231_v5 = vld [vmem:[#allocation2 + $0xa0] sm:$0xff] }
  0x3a   :  { %6076 = vst [vmem:[#allocation11_spill] sm:$0xff] %v4172_v21  ;;  %3135 = vmatprep.subr.bf16.mxu0 %v3960_v8  ;;  %v723_v27 = vand.u32 4294901760, %v4162_v42  ;;  %3223 = vmatprep.subr.bf16.mxu1 %v3222_v26  ;;  %v3224_v60 = vpack.c.bf16 %v902_v46, %v890_v41  ;;  %v925_v43 = vsub.f32 %v4158_v63, %v5798_v2  ;;  %v5808_v34 = vand.u32 4294901760, %v4174_v37 }
  0x3b   :  { %v4193_v8 = vpack.c.bf16 %v707_v51, %v703_v48  ;;  %v3226_v41 = vpack.c.bf16 %v920_v56, %v908_v3  ;;  %v914_v46 = vand.u32 4294901760, %v913_v11  ;;  %v4205_v26 = vsub.f32 %v4160_v12, %v719_v23  ;;  %v4233_v11 = vld [vmem:[#allocation2 + $0xb0] sm:$0xff] }
  0x3c   :  { %427 = vmatmul.mubr.f32.vlgmr.msra.gmra.mrb[0].mxu0 %v141_v44  ;;  %v4210_v48 = vsub.f32 %v4162_v42, %v723_v27  ;;  %v926_v54 = vand.u32 4294901760, %v925_v43  ;;  %v5805_v36 = vand.u32 4294901760, %v4184_v39  ;;  %v4218_v44 = vsub.f32 %v4174_v37, %v5808_v34  ;;  %3225 = vmatpush1.bf16.msra.mxu1 %v3224_v60  ;;  %v4308_v34 = vld [vmem:[#allocation2 + $0xc0] sm:$0xff] }
  0x3d   :  { %6077 = vst [vmem:[#allocation12_spill] sm:$0xff] %v4193_v8  ;;  %3137 = vmatpush1.bf16.msra.mxu0 %v3962_v9  ;;  %521 = vmatprep.mubr.f32.mxu0 %v3806_v0  ;;  %v4224_v59 = vpack.c.bf16 %v709_v17, %v705_v58  ;;  %v5797_v9 = vand.u32 4294901760, %v4205_v26  ;;  %v5802_v3 = vand.u32 4294901760, %v4196_v50  ;;  %v5800_v56 = vand.u32 4294901760, %v4198_v33 }
  0x3e   :  { %3139 = vmatprep.subr.bf16.mxu0 %v3968_v13  ;;  %v5796_v51 = vand.u32 4294901760, %v4210_v48  ;;  %3227 = vmatprep.subr.bf16.mxu1 %v3226_v41  ;;  %v3228_v6 = vpack.c.bf16 %v926_v54, %v914_v46  ;;  %v5801_v47 = vand.u32 4294901760, %v4218_v44  ;;  %v4239_v13 = vsub.f32 %v4184_v39, %v5805_v36 }
  0x3f   :  { %6078 = vst [vmem:[#allocation13_spill] sm:$0xff] %v4224_v59  ;;  %v6079_v58 = vand.u32 4294901760, %v4062_v1  ;;  %v6080_v17 = vand.u32 4294901760, %v4067_v53  ;;  %v931_v43 = vsub.f32 %v4205_v26, %v5797_v9  ;;  %v4256_v46 = vsub.f32 %v4196_v50, %v5802_v3 }
  0x40   :  { %v943_v41 = vsub.f32 %v4210_v48, %v5796_v51  ;;  %v4261_v1 = vsub.f32 %v4198_v33, %v5800_v56  ;;  %v937_v53 = vsub.f32 %v4218_v44, %v5801_v47  ;;  %v5803_v54 = vand.u32 4294901760, %v4239_v13  ;;  %3229 = vmatpush1.bf16.msra.mxu1 %v3228_v6  ;;  %v4288_v6 = vld [vmem:[#allocation2 + $0xd8] sm:$0xff] }
  0x41   :  { %v4245_v60 = vpack.c.bf16 %v6080_v17, %v6079_v58  ;;  %3141 = vmatpush1.bf16.msra.mxu0 %v3970_v14  ;;  %v5804_v58 = vand.u32 4294901760, %v4231_v5  ;;  %v5806_v17 = vand.u32 4294901760, %v4233_v11  ;;  %v932_v51 = vand.u32 4294901760, %v931_v43  ;;  %v4273_v14 = vld [vmem:[#allocation2 + $0xc8] sm:$0xff] }
  0x42   :  { %3143 = vmatprep.subr.bf16.mxu0 %v3888_v16  ;;  %v944_v9 = vand.u32 4294901760, %v943_v41  ;;  %v5807_v2 = vand.u32 4294901760, %v4256_v46  ;;  %v5809_v10 = vand.u32 4294901760, %v4261_v1  ;;  %v938_v56 = vand.u32 4294901760, %v937_v53 }
  0x43   :  { %6081 = vst [vmem:[#allocation14_spill] sm:$0xff] %v4245_v60  ;;  %v949_v47 = vsub.f32 %v4239_v13, %v5803_v54  ;;  %v4281_v3 = vsub.f32 %v4231_v5, %v5804_v58  ;;  %v4286_v16 = vsub.f32 %v4233_v11, %v5806_v17  ;;  %v6082_v54 = vand.u32 4294901760, %v4091_v61 }
  0x44   :  { %523 = vmatmul.mubr.f32.vlgmr.msra.gmra.mrb[0].mxu0 %v3909_v28  ;;  %v3230_v43 = vpack.c.bf16 %v944_v9, %v932_v51  ;;  %v955_v41 = vsub.f32 %v4256_v46, %v5807_v2  ;;  %v967_v53 = vsub.f32 %v4261_v1, %v5809_v10  ;;  %v6083_v58 = vand.u32 4294901760, %v4101_v4  ;;  %v4310_v10 = vld [vmem:[#allocation2 + $0xd0] sm:$0xff] }
  0x45   :  { %3145 = vmatpush1.bf16.msra.mxu0 %v3896_v20  ;;  %601 = vmatprep.mubr.f32.mxu0 %v3806_v0  ;;  %v950_v17 = vand.u32 4294901760, %v949_v47  ;;  %v5811_v9 = vand.u32 4294901760, %v4281_v3  ;;  %v5810_v51 = vand.u32 4294901760, %v4286_v16  ;;  %v5819_v2 = vand.u32 4294901760, %v4273_v14 }
  0x46   :  { %v4301_v36 = vpack.c.bf16 %v6083_v58, %v6082_v54  ;;  %3147 = vmatprep.subr.bf16.mxu0 %v3900_v22  ;;  %3231 = vmatprep.subr.bf16.mxu1 %v3230_v43  ;;  %v956_v61 = vand.u32 4294901760, %v955_v41  ;;  %v968_v4 = vand.u32 4294901760, %v967_v53  ;;  %v5813_v20 = vand.u32 4294901760, %v4288_v6  ;;  %v4331_v43 = vld [vmem:[#allocation2 + $0xe8] sm:$0xff] }
  0x47   :  { %v4318_v0 = vpack.c.bf16 %v723_v27, %v719_v23  ;;  %v3232_v47 = vpack.c.bf16 %v950_v17, %v938_v56  ;;  %v961_v54 = vsub.f32 %v4281_v3, %v5811_v9  ;;  %v973_v22 = vsub.f32 %v4286_v16, %v5810_v51  ;;  %v4340_v56 = vld [vmem:[#allocation2 + $0xf8] sm:$0xff] }
  0x48   :  { %6084 = vst [vmem:[#allocation15_spill] sm:$0xff] %v4301_v36  ;;  %v4329_v58 = vsub.f32 %v4273_v14, %v5819_v2  ;;  %v3234_v12 = vpack.c.bf16 %v968_v4, %v956_v61  ;;  %v4336_v42 = vsub.f32 %v4288_v6, %v5813_v20  ;;  %v5812_v23 = vand.u32 4294901760, %v4308_v34 }
  0x49   :  { %6085 = vst [vmem:[#allocation16_spill] sm:$0xff] %v4318_v0  ;;  %v5814_v27 = vand.u32 4294901760, %v4310_v10  ;;  %3149 = vmatpush1.bf16.msra.mxu0 %v3915_v32  ;;  %3233 = vmatpush1.bf16.msra.mxu1 %v3232_v47  ;;  %v962_v17 = vand.u32 4294901760, %v961_v54  ;;  %v974_v41 = vand.u32 4294901760, %v973_v22  ;;  %v6086_v61 = vand.u32 4294901760, %v4174_v37  ;;  %v4365_v54 = vld [vmem:[#allocation2 + $0xf0] sm:$0xff] }
  0x4a   :  { %v5815_v53 = vand.u32 4294901760, %v4329_v58  ;;  %v6087_v4 = vand.u32 4294901760, %v4184_v39  ;;  %3151 = vmatprep.subr.bf16.mxu0 %v4065_v52  ;;  %3235 = vmatprep.subr.bf16.mxu1 %v3234_v12  ;;  %v5816_v9 = vand.u32 4294901760, %v4336_v42  ;;  %v4355_v32 = vsub.f32 %v4308_v34, %v5812_v23  ;;  %v4363_v39 = vld [vmem:[#allocation2 + $0xe0] sm:$0xff] }
  0x4b   :  { %v4360_v47 = vsub.f32 %v4310_v10, %v5814_v27  ;;  %v5817_v37 = vand.u32 4294901760, %v4331_v43  ;;  %v3236_v22 = vpack.c.bf16 %v974_v41, %v962_v17  ;;  %v6092_v23 = vand.u32 4294901760, %v4198_v33 }
  0x4c   :  { %v4348_v51 = vpack.c.bf16 %v6087_v4, %v6086_v61  ;;  %6089 = vst [vmem:[#allocation18_spill] sm:$0xff] %v4355_v32  ;;  %v979_v12 = vsub.f32 %v4329_v58, %v5815_v53  ;;  %v5818_v61 = vand.u32 4294901760, %v4340_v56  ;;  %v6091_v4 = vand.u32 4294901760, %v4196_v50  ;;  %603 = vmatmul.mubr.f32.vlgmr.msra.gmra.mrb[0].mxu0 %v3909_v28 }
  0x4d   :  { %6090 = vst [vmem:[#allocation19_spill] sm:$0xff] %v4360_v47  ;;  %v991_v27 = vsub.f32 %v4336_v42, %v5816_v9  ;;  %v5820_v17 = vand.u32 4294901760, %v4355_v32  ;;  %v5821_v41 = vand.u32 4294901760, %v4360_v47  ;;  %v4386_v53 = vsub.f32 %v4331_v43, %v5817_v37  ;;  %3153 = vmatpush1.bf16.msra.mxu0 %v4088_v55  ;;  %3237 = vmatpush1.bf16.msra.mxu1 %v3236_v22  ;;  %v4404_v37 = vld [vmem:[#allocation2 + $0x108] sm:$0xff] }
  0x4e   :  { %6088 = vst [vmem:[#allocation17_spill] sm:$0xff] %v4348_v51  ;;  %v4375_v20 = vpack.c.bf16 %v6092_v23, %v6091_v4  ;;  %v980_v50 = vand.u32 4294901760, %v979_v12  ;;  %v4392_v28 = vsub.f32 %v4340_v56, %v5818_v61  ;;  %v5830_v33 = vand.u32 4294901760, %v4363_v39  ;;  %3155 = vmatprep.subr.bf16.mxu0 %v4118_v62  ;;  %v4423_v12 = vld [vmem:[#allocation2 + $0x118] sm:$0xff] }
  0x4f   :  { %v5831_v23 = vand.u32 4294901760, %v4365_v54  ;;  %v992_v4 = vand.u32 4294901760, %v991_v27  ;;  %v985_v9 = vsub.f32 %v4355_v32, %v5820_v17  ;;  %v997_v22 = vsub.f32 %v4360_v47, %v5821_v41 }
  0x50   :  { %6093 = vst [vmem:[#allocation20_spill] sm:$0xff] %v4375_v20  ;;  %6094 = vst [vmem:[#allocation21_spill] sm:$0xff] %v4392_v28  ;;  %v4410_v2 = vsub.f32 %v4363_v39, %v5830_v33  ;;  %v6097_v17 = vand.u32 4294901760, %v4231_v5  ;;  %v6098_v41 = vand.u32 4294901760, %v4233_v11  ;;  %v6100_v47 = vand.u32 4294901760, %v4386_v53 }
  0x51   :  { %v4415_v27 = vsub.f32 %v4365_v54, %v5831_v23  ;;  %v3238_v55 = vpack.c.bf16 %v992_v4, %v980_v50  ;;  %v986_v61 = vand.u32 4294901760, %v985_v9  ;;  %v998_v52 = vand.u32 4294901760, %v997_v22  ;;  %3157 = vmatpush1.bf16.msra.mxu0 %v4172_v21  ;;  %v4437_v9 = vld [vmem:[#allocation2 + $0x110] sm:$0xff] }
  0x52   :  { %6095 = vst [vmem:[#allocation22_spill] sm:$0xff] %v4410_v2  ;;  %v4421_v62 = vpack.c.bf16 %v6098_v41, %v6097_v17  ;;  %v1003_v33 = vsub.f32 %v4386_v53, %v6100_v47  ;;  %v6101_v23 = vand.u32 4294901760, %v4392_v28  ;;  %v4435_v41 = vld [vmem:[#allocation2 + $0x100] sm:$0xff]  ;;  %3159 = vmatprep.subr.bf16.mxu0 %v4193_v8  ;;  %v5840_v4 = vand.u32 4294901760, %v4423_v12 }
  0x53   :  { %6096 = vst [vmem:[#allocation23_spill] sm:$0xff] %v4415_v27  ;;  %3239 = vmatprep.subr.bf16.mxu1 %v3238_v55  ;;  %v3240_v47 = vpack.c.bf16 %v998_v52, %v986_v61  ;;  %v6102_v22 = vand.u32 4294901760, %v4273_v14  ;;  %v6105_v17 = vand.u32 4294901760, %v4410_v2  ;;  %v6107_v52 = vand.u32 4294901760, %v4404_v37  ;;  %v4458_v61 = vld [vmem:[#allocation2 + $0x128] sm:$0xff] }
  0x54   :  { %6099 = vst [vmem:[#allocation24_spill] sm:$0xff] %v4421_v62  ;;  %v1015_v32 = vsub.f32 %v4392_v28, %v6101_v23  ;;  %v1004_v50 = vand.u32 4294901760, %v1003_v33  ;;  %v6103_v23 = vand.u32 4294901760, %v4288_v6  ;;  %v6106_v28 = vand.u32 4294901760, %v4415_v27 }
  0x55   :  { %v1009_v21 = vsub.f32 %v4410_v2, %v6105_v17  ;;  %v4456_v55 = vsub.f32 %v4404_v37, %v6107_v52  ;;  %3241 = vmatpush1.bf16.msra.mxu1 %v3240_v47  ;;  %v4463_v14 = vsub.f32 %v4423_v12, %v5840_v4  ;;  %v6110_v33 = vand.u32 4294901760, %v4308_v34  ;;  %3161 = vmatpush1.bf16.msra.mxu0 %v4224_v59 }
  0x56   :  { %v4445_v5 = vpack.c.bf16 %v6103_v23, %v6102_v22  ;;  %v1016_v11 = vand.u32 4294901760, %v1015_v32  ;;  %v1021_v8 = vsub.f32 %v4415_v27, %v6106_v28  ;;  %v6111_v28 = vand.u32 4294901760, %v4310_v10  ;;  %v4473_v22 = vld [vmem:[#allocation2 + $0x138] sm:$0xff]  ;;  %3163 = vmatprep.subr.bf16.mxu0 %v4245_v60 }
  0x57   :  { %6108 = vst [vmem:[#allocation26_spill] sm:$0xff] %v4456_v55  ;;  %6109 = vst [vmem:[#allocation27_spill] sm:$0xff] %v4463_v14  ;;  %v1010_v23 = vand.u32 4294901760, %v1009_v21  ;;  %v5847_v4 = vand.u32 4294901760, %v4456_v55  ;;  %v6113_v32 = vand.u32 4294901760, %v4435_v41  ;;  %v6115_v10 = vand.u32 4294901760, %v4437_v9 }
  0x58   :  { %6104 = vst [vmem:[#allocation25_spill] sm:$0xff] %v4445_v5  ;;  %v4471_v17 = vpack.c.bf16 %v6111_v28, %v6110_v33  ;;  %v3242_v47 = vpack.c.bf16 %v1016_v11, %v1004_v50  ;;  %v1022_v52 = vand.u32 4294901760, %v1021_v8  ;;  %v4490_v21 = vld [vmem:[#allocation2 + $0x120] sm:$0xff]  ;;  %v4492_v8 = vld [vmem:[#allocation2 + $0x130] sm:$0xff]  ;;  %v6117_v6 = vand.u32 4294901760, %v4331_v43 }
  0x59   :  { %v4482_v34 = vsub.f32 %v4435_v41, %v6113_v32  ;;  %v4487_v33 = vsub.f32 %v4437_v9, %v6115_v10  ;;  %v1027_v28 = vsub.f32 %v4456_v55, %v5847_v4  ;;  %v5848_v32 = vand.u32 4294901760, %v4473_v22  ;;  %3165 = vmatpush1.bf16.msra.mxu0 %v4301_v36  ;;  %v4530_v4 = vld [vmem:[#allocation2 + $0x148] sm:$0xff] }
  0x5a   :  { %6112 = vst [vmem:[#allocation28_spill] sm:$0xff] %v4471_v17  ;;  %3243 = vmatprep.subr.bf16.mxu1 %v3242_v47  ;;  %v3244_v50 = vpack.c.bf16 %v1022_v52, %v1010_v23  ;;  %v6118_v60 = vand.u32 4294901760, %v4340_v56  ;;  %v6120_v11 = vand.u32 4294901760, %v4463_v14  ;;  %v6121_v23 = vand.u32 4294901760, %v4458_v61  ;;  %3167 = vmatprep.subr.bf16.mxu0 %v4318_v0 }
  0x5b   :  { %6114 = vst [vmem:[#allocation29_spill] sm:$0xff] %v4482_v34  ;;  %6116 = vst [vmem:[#allocation30_spill] sm:$0xff] %v4487_v33  ;;  %v5851_v27 = vand.u32 4294901760, %v4482_v34  ;;  %v5852_v47 = vand.u32 4294901760, %v4487_v33  ;;  %v1028_v43 = vand.u32 4294901760, %v1027_v28  ;;  %v5861_v56 = vand.u32 4294901760, %v4490_v21 }
  0x5c   :  { %v4502_v10 = vpack.c.bf16 %v6118_v60, %v6117_v6  ;;  %v1039_v59 = vsub.f32 %v4463_v14, %v6120_v11  ;;  %v4512_v52 = vsub.f32 %v4458_v61, %v6121_v23  ;;  %3245 = vmatpush1.bf16.msra.mxu1 %v3244_v50  ;;  %v4518_v60 = vsub.f32 %v4473_v22, %v5848_v32  ;;  %v4549_v28 = vld [vmem:[#allocation2 + $0x158] sm:$0xff] }
  0x5d   :  { %v1033_v23 = vsub.f32 %v4482_v34, %v5851_v27  ;;  %v1045_v50 = vsub.f32 %v4487_v33, %v5852_v47  ;;  %v4536_v6 = vsub.f32 %v4490_v21, %v5861_v56  ;;  %v6127_v27 = vand.u32 4294901760, %v4363_v39  ;;  %3169 = vmatpush1.bf16.msra.mxu0 %v4348_v51 }
  0x5e   :  { %6119 = vst [vmem:[#allocation31_spill] sm:$0xff] %v4502_v10  ;;  %6122 = vst [vmem:[#allocation32_spill] sm:$0xff] %v4512_v52  ;;  %v1040_v11 = vand.u32 4294901760, %v1039_v59  ;;  %v6125_v59 = vand.u32 4294901760, %v4492_v8  ;;  %v6128_v47 = vand.u32 4294901760, %v4365_v54  ;;  %v6130_v14 = vand.u32 4294901760, %v4512_v52  ;;  %3171 = vmatprep.subr.bf16.mxu0 %v4375_v20 }
  0x5f   :  { %6123 = vst [vmem:[#allocation33_spill] sm:$0xff] %v4518_v60  ;;  %6124 = vst [vmem:[#allocation34_spill] sm:$0xff] %v4536_v6  ;;  %v1034_v32 = vand.u32 4294901760, %v1033_v23  ;;  %v1046_v34 = vand.u32 4294901760, %v1045_v50  ;;  %v5870_v23 = vand.u32 4294901760, %v4549_v28  ;;  %v6132_v50 = vand.u32 4294901760, %v4404_v37 }
  0x60   :  { %v4541_v0 = vsub.f32 %v4492_v8, %v6125_v59  ;;  %v4547_v36 = vpack.c.bf16 %v6128_v47, %v6127_v27  ;;  %v3246_v33 = vpack.c.bf16 %v1040_v11, %v1028_v43  ;;  %v1051_v56 = vsub.f32 %v4512_v52, %v6130_v14  ;;  %v4561_v47 = vld [vmem:[#allocation2 + $0x140] sm:$0xff]  ;;  %v4563_v43 = vld [vmem:[#allocation2 + $0x150] sm:$0xff] }
  0x61   :  { %v6131_v59 = vand.u32 4294901760, %v4518_v60  ;;  %v3248_v14 = vpack.c.bf16 %v1046_v34, %v1034_v32  ;;  %v6135_v27 = vand.u32 4294901760, %v4536_v6  ;;  %v6137_v34 = vand.u32 4294901760, %v4530_v4  ;;  %v4584_v32 = vld [vmem:[#allocation2 + $0x168] sm:$0xff]  ;;  %3173 = vmatpush1.bf16.msra.mxu0 %v4421_v62 }
  0x62   :  { %6126 = vst [vmem:[#allocation35_spill] sm:$0xff] %v4541_v0  ;;  %6129 = vst [vmem:[#allocation36_spill] sm:$0xff] %v4547_v36  ;;  %3247 = vmatprep.subr.bf16.mxu1 %v3246_v33  ;;  %v1052_v11 = vand.u32 4294901760, %v1051_v56  ;;  %v4589_v37 = vsub.f32 %v4549_v28, %v5870_v23  ;;  %v6140_v56 = vand.u32 4294901760, %v4435_v41  ;;  %3175 = vmatprep.subr.bf16.mxu0 %v4445_v5  ;;  %v6148_v5 = vand.u32 4294901760, %v4473_v22 }
  0x63   :  { %v1063_v55 = vsub.f32 %v4518_v60, %v6131_v59  ;;  %v6133_v59 = vand.u32 4294901760, %v4423_v12  ;;  %v1057_v51 = vsub.f32 %v4536_v6, %v6135_v27  ;;  %v6136_v60 = vand.u32 4294901760, %v4541_v0  ;;  %3249 = vmatpush1.bf16.msra.mxu1 %v3248_v14 }
  0x64   :  { %v4582_v33 = vsub.f32 %v4530_v4, %v6137_v34  ;;  %6139 = vst [vmem:[#allocation39_spill] sm:$0xff] %v4589_v37  ;;  %v6147_v12 = vand.u32 4294901760, %v4458_v61 }
  0x65   :  { %v4571_v39 = vpack.c.bf16 %v6133_v59, %v6132_v50  ;;  %v1064_v54 = vand.u32 4294901760, %v1063_v55  ;;  %v1069_v20 = vsub.f32 %v4541_v0, %v6136_v60  ;;  %v6141_v60 = vand.u32 4294901760, %v4437_v9  ;;  %v4599_v50 = vld [vmem:[#allocation2 + $0x178] sm:$0xff]  ;;  %3177 = vmatpush1.bf16.msra.mxu0 %v4471_v17 }
  0x66   :  { %6138 = vst [vmem:[#allocation38_spill] sm:$0xff] %v4582_v33  ;;  %v1058_v59 = vand.u32 4294901760, %v1057_v51  ;;  %v5877_v23 = vand.u32 4294901760, %v4582_v33  ;;  %v6143_v55 = vand.u32 4294901760, %v4561_v47  ;;  %v6145_v9 = vand.u32 4294901760, %v4563_v43  ;;  %v4616_v51 = vld [vmem:[#allocation2 + $0x160] sm:$0xff]  ;;  %3179 = vmatprep.subr.bf16.mxu0 %v4502_v10 }
  0x67   :  { %6134 = vst [vmem:[#allocation37_spill] sm:$0xff] %v4571_v39  ;;  %v4597_v27 = vpack.c.bf16 %v6141_v60, %v6140_v56  ;;  %v3250_v14 = vpack.c.bf16 %v1064_v54, %v1052_v11  ;;  %v1070_v34 = vand.u32 4294901760, %v1069_v20  ;;  %v4618_v20 = vld [vmem:[#allocation2 + $0x170] sm:$0xff]  ;;  %v6150_v54 = vand.u32 4294901760, %v4589_v37 }
  0x68   :  { %v4608_v41 = vsub.f32 %v4561_v47, %v6143_v55  ;;  %v4613_v56 = vsub.f32 %v4563_v43, %v6145_v9  ;;  %v1075_v60 = vsub.f32 %v4582_v33, %v5877_v23  ;;  %v5878_v55 = vand.u32 4294901760, %v4599_v50  ;;  %v4656_v23 = vld [vmem:[#allocation2 + $0x188] sm:$0xff] }
  0x69   :  { %6142 = vst [vmem:[#allocation40_spill] sm:$0xff] %v4597_v27  ;;  %3251 = vmatprep.subr.bf16.mxu1 %v3250_v14  ;;  %v3252_v11 = vpack.c.bf16 %v1070_v34, %v1058_v59  ;;  %v4628_v9 = vpack.c.bf16 %v6148_v5, %v6147_v12  ;;  %v1087_v62 = vsub.f32 %v4589_v37, %v6150_v54  ;;  %v6151_v59 = vand.u32 4294901760, %v4584_v32 }
  0x6a   :  { %6144 = vst [vmem:[#allocation41_spill] sm:$0xff] %v4608_v41  ;;  %6146 = vst [vmem:[#allocation42_spill] sm:$0xff] %v4613_v56  ;;  %v5881_v0 = vand.u32 4294901760, %v4608_v41  ;;  %v5882_v14 = vand.u32 4294901760, %v4613_v56  ;;  %v1076_v61 = vand.u32 4294901760, %v1075_v60  ;;  %v4644_v5 = vsub.f32 %v4599_v50, %v5878_v55  ;;  %v4675_v60 = vld [vmem:[#allocation2 + $0x198] sm:$0xff]  ;;  %3181 = vmatpush1.bf16.msra.mxu0 %v4547_v36 }
  0x6b   :  { %6149 = vst [vmem:[#allocation43_spill] sm:$0xff] %v4628_v9  ;;  %v4638_v34 = vsub.f32 %v4584_v32, %v6151_v59  ;;  %3253 = vmatpush1.bf16.msra.mxu1 %v3252_v11  ;;  %v5891_v22 = vand.u32 4294901760, %v4616_v51  ;;  %v1088_v54 = vand.u32 4294901760, %v1087_v62  ;;  %v6155_v62 = vand.u32 4294901760, %v4618_v20  ;;  %3183 = vmatprep.subr.bf16.mxu0 %v4571_v39 }
  0x6c   :  { %6153 = vst [vmem:[#allocation45_spill] sm:$0xff] %v4644_v5  ;;  %v1081_v59 = vsub.f32 %v4608_v41, %v5881_v0  ;;  %v1093_v11 = vsub.f32 %v4613_v56, %v5882_v14  ;;  %v6157_v0 = vand.u32 4294901760, %v4490_v21  ;;  %v6158_v14 = vand.u32 4294901760, %v4492_v8 }
  0x6d   :  { %6152 = vst [vmem:[#allocation44_spill] sm:$0xff] %v4638_v34  ;;  %v4662_v12 = vsub.f32 %v4616_v51, %v5891_v22  ;;  %v4667_v10 = vsub.f32 %v4618_v20, %v6155_v62  ;;  %v3254_v56 = vpack.c.bf16 %v1088_v54, %v1076_v61  ;;  %v6160_v37 = vand.u32 4294901760, %v4638_v34  ;;  %v4689_v61 = vld [vmem:[#allocation2 + $0x190] sm:$0xff] }
  0x6e   :  { %v4673_v17 = vpack.c.bf16 %v6158_v14, %v6157_v0  ;;  %v1082_v55 = vand.u32 4294901760, %v1081_v59  ;;  %v1094_v41 = vand.u32 4294901760, %v1093_v11  ;;  %v6161_v62 = vand.u32 4294901760, %v4644_v5  ;;  %v4687_v14 = vld [vmem:[#allocation2 + $0x180] sm:$0xff]  ;;  %3185 = vmatpush1.bf16.msra.mxu0 %v4597_v27 }
  0x6f   :  { %6154 = vst [vmem:[#allocation46_spill] sm:$0xff] %v4662_v12  ;;  %6156 = vst [vmem:[#allocation47_spill] sm:$0xff] %v4667_v10  ;;  %v1099_v22 = vsub.f32 %v4638_v34, %v6160_v37  ;;  %3255 = vmatprep.subr.bf16.mxu1 %v3254_v56  ;;  %v5900_v59 = vand.u32 4294901760, %v4675_v60  ;;  %v6162_v11 = vand.u32 4294901760, %v4530_v4  ;;  %v6165_v8 = vand.u32 4294901760, %v4662_v12  ;;  %3187 = vmatprep.subr.bf16.mxu0 %v4628_v9 }
  0x70   :  { %6159 = vst [vmem:[#allocation48_spill] sm:$0xff] %v4673_v17  ;;  %v1111_v33 = vsub.f32 %v4644_v5, %v6161_v62  ;;  %v3256_v37 = vpack.c.bf16 %v1094_v41, %v1082_v55  ;;  %v6163_v62 = vand.u32 4294901760, %v4549_v28  ;;  %v6166_v5 = vand.u32 4294901760, %v4667_v10 }
  0x71   :  { %v1100_v54 = vand.u32 4294901760, %v1099_v22  ;;  %v1105_v36 = vsub.f32 %v4662_v12, %v6165_v8  ;;  %v6167_v41 = vand.u32 4294901760, %v4656_v23  ;;  %v4710_v22 = vld [vmem:[#allocation2 + $0x1a8] sm:$0xff]  ;;  %v4715_v4 = vsub.f32 %v4675_v60, %v5900_v59 }
  0x72   :  { %v4697_v21 = vpack.c.bf16 %v6163_v62, %v6162_v11  ;;  %v1112_v0 = vand.u32 4294901760, %v1111_v33  ;;  %v1117_v56 = vsub.f32 %v4667_v10, %v6166_v5  ;;  %3257 = vmatpush1.bf16.msra.mxu1 %v3256_v37  ;;  %v6170_v8 = vand.u32 4294901760, %v4561_v47  ;;  %v4725_v62 = vld [vmem:[#allocation2 + $0x1b8] sm:$0xff]  ;;  %3189 = vmatpush1.bf16.msra.mxu0 %v4673_v17 }
  0x73   :  { %v4708_v55 = vsub.f32 %v4656_v23, %v6167_v41  ;;  %6169 = vst [vmem:[#allocation51_spill] sm:$0xff] %v4715_v4  ;;  %v6171_v5 = vand.u32 4294901760, %v4563_v43  ;;  %v1106_v41 = vand.u32 4294901760, %v1105_v36  ;;  %v6173_v33 = vand.u32 4294901760, %v4687_v14  ;;  %v4742_v36 = vld [vmem:[#allocation2 + $0x1a0] sm:$0xff] }
  0x74   :  { %6164 = vst [vmem:[#allocation49_spill] sm:$0xff] %v4697_v21  ;;  %v3258_v37 = vpack.c.bf16 %v1112_v0, %v1100_v54  ;;  %v1118_v39 = vand.u32 4294901760, %v1117_v56  ;;  %v6175_v43 = vand.u32 4294901760, %v4689_v61  ;;  %v4744_v54 = vld [vmem:[#allocation2 + $0x1b0] sm:$0xff]  ;;  %v6177_v28 = vand.u32 4294901760, %v4584_v32  ;;  %3191 = vmatprep.subr.bf16.mxu0 %v4697_v21 }
  0x75   :  { %6168 = vst [vmem:[#allocation50_spill] sm:$0xff] %v4708_v55  ;;  %v4723_v11 = vpack.c.bf16 %v6171_v5, %v6170_v8  ;;  %v5907_v59 = vand.u32 4294901760, %v4708_v55  ;;  %v4734_v47 = vsub.f32 %v4687_v14, %v6173_v33  ;;  %v5908_v33 = vand.u32 4294901760, %v4725_v62 }
  0x76   :  { %v4739_v8 = vsub.f32 %v4689_v61, %v6175_v43  ;;  %3259 = vmatprep.subr.bf16.mxu1 %v3258_v37  ;;  %v3260_v56 = vpack.c.bf16 %v1118_v39, %v1106_v41  ;;  %v6178_v9 = vand.u32 4294901760, %v4599_v50  ;;  %v6180_v0 = vand.u32 4294901760, %v4715_v4 }
  0x77   :  { %6172 = vst [vmem:[#allocation52_spill] sm:$0xff] %v4723_v11  ;;  %6174 = vst [vmem:[#allocation53_spill] sm:$0xff] %v4734_v47  ;;  %v1123_v5 = vsub.f32 %v4708_v55, %v5907_v59  ;;  %v5911_v10 = vand.u32 4294901760, %v4734_v47  ;;  %v6181_v37 = vand.u32 4294901760, %v4710_v22  ;;  %v4770_v50 = vsub.f32 %v4725_v62, %v5908_v33  ;;  %3193 = vmatpush1.bf16.msra.mxu0 %v4723_v11 }
  0x78   :  { %6176 = vst [vmem:[#allocation54_spill] sm:$0xff] %v4739_v8  ;;  %v4754_v43 = vpack.c.bf16 %v6178_v9, %v6177_v28  ;;  %v1135_v27 = vsub.f32 %v4715_v4, %v6180_v0  ;;  %v5914_v39 = vand.u32 4294901760, %v4739_v8  ;;  %3261 = vmatpush1.bf16.msra.mxu1 %v3260_v56  ;;  %v5917_v9 = vand.u32 4294901760, %v4742_v36 }
  0x79   :  { %v4764_v41 = vsub.f32 %v4710_v22, %v6181_v37  ;;  %v1124_v32 = vand.u32 4294901760, %v1123_v5  ;;  %6183 = vst [vmem:[#allocation57_spill] sm:$0xff] %v4770_v50  ;;  %v5920_v28 = vand.u32 4294901760, %v4744_v54  ;;  %v1129_v37 = vsub.f32 %v4734_v47, %v5911_v10 }
  0x7a   :  { %6179 = vst [vmem:[#allocation55_spill] sm:$0xff] %v4754_v43  ;;  %v1136_v0 = vand.u32 4294901760, %v1135_v27  ;;  %v1141_v56 = vsub.f32 %v4739_v8, %v5914_v39  ;;  %v5922_v59 = vand.u32 4294901760, %v4770_v50  ;;  %v4786_v33 = vsub.f32 %v4742_v36, %v5917_v9  ;;  %3195 = vmatprep.subr.bf16.mxu0 %v4754_v43  ;;  %v671_v43 = vld [vmem:[#allocation2 + $0x1e0] sm:$0xff] }
  0x7b   :  { %6182 = vst [vmem:[#allocation56_spill] sm:$0xff] %v4764_v41  ;;  %v5921_v5 = vand.u32 4294901760, %v4764_v41  ;;  %v4791_v27 = vsub.f32 %v4744_v54, %v5920_v28  ;;  %v1130_v10 = vand.u32 4294901760, %v1129_v37  ;;  %v6186_v28 = vand.u32 4294901760, %v4616_v51 }
  0x7c   :  { %6184 = vst [vmem:[#allocation58_spill] sm:$0xff] %v4786_v33  ;;  %v3262_v21 = vpack.c.bf16 %v1136_v0, %v1124_v32  ;;  %v1142_v17 = vand.u32 4294901760, %v1141_v56  ;;  %v1159_v8 = vsub.f32 %v4770_v50, %v5922_v59  ;;  %v5928_v9 = vand.u32 4294901760, %v4786_v33 }
  0x7d   :  { %6185 = vst [vmem:[#allocation59_spill] sm:$0xff] %v4791_v27  ;;  %v1147_v39 = vsub.f32 %v4764_v41, %v5921_v5  ;;  %v5927_v47 = vand.u32 4294901760, %v4791_v27  ;;  %v6187_v32 = vand.u32 4294901760, %v4618_v20 }
  0x7e   :  { %3263 = vmatprep.subr.bf16.mxu1 %v3262_v21  ;;  %v3264_v37 = vpack.c.bf16 %v1142_v17, %v1130_v10  ;;  %v1160_v5 = vand.u32 4294901760, %v1159_v8  ;;  %v1153_v59 = vsub.f32 %v4786_v33, %v5928_v9  ;;  %v4816_v10 = vld [vmem:[#allocation2 + $0x1c8] sm:$0xff]  ;;  %v4818_v21 = vld [vmem:[#allocation2 + $0x1d8] sm:$0xff]  ;;  %v809_v33 = vand.u32 4294901760, %v671_v43 }
  0x7f   :  { %v4806_v0 = vpack.c.bf16 %v6187_v32, %v6186_v28  ;;  %v1148_v56 = vand.u32 4294901760, %v1147_v39  ;;  %v1165_v11 = vsub.f32 %v4791_v27, %v5927_v47  ;;  %v5933_v8 = vand.u32 4294901760, %v4816_v10  ;;  %v4822_v28 = vld [vmem:[#allocation2 + $0x1c0] sm:$0xff]  ;;  %v4824_v32 = vld [vmem:[#allocation2 + $0x1d0] sm:$0xff] }
  0x80   :  { %3265 = vmatpush1.bf16.msra.mxu1 %v3264_v37  ;;  %v1154_v50 = vand.u32 4294901760, %v1153_v59  ;;  %v803_v39 = vand.u32 4294901760, %v4818_v21  ;;  %v801_v59 = vand.u32 4294901760, %v4822_v28  ;;  %v4862_v6 = vsub.f32 %v671_v43, %v809_v33 }
  0x81   :  { %6188 = vst [vmem:[#allocation60_spill] sm:$0xff] %v4806_v0  ;;  %v3266_v51 = vpack.c.bf16 %v1160_v5, %v1148_v56  ;;  %v1166_v20 = vand.u32 4294901760, %v1165_v11  ;;  %3197 = vmatpush1.bf16.msra.mxu0 %v4806_v0  ;;  %v805_v11 = vand.u32 4294901760, %v4824_v32 }
  0x82   :  { %v4834_v5 = vsub.f32 %v4818_v21, %v803_v39  ;;  %v4837_v37 = vsub.f32 %v4822_v28, %v801_v59  ;;  %v5969_v2 = vand.u32 4294901760, %v4862_v6 }
  0x83   :  { %3267 = vmatprep.subr.bf16.mxu1 %v3266_v51  ;;  %v3268_v17 = vpack.c.bf16 %v1166_v20, %v1154_v50  ;;  %v4831_v50 = vsub.f32 %v4816_v10, %v5933_v8  ;;  %v4840_v56 = vsub.f32 %v4824_v32, %v805_v11  ;;  %v672_v51 = vld [vmem:[#allocation2 + $0x1e8] sm:$0xff]  ;;  %v674_v20 = vld [vmem:[#allocation2 + $0x1f8] sm:$0xff]  ;;  %v673_v8 = vld [vmem:[#allocation2 + $0x1f0] sm:$0xff] }
  0x84   :  { %6190 = vst [vmem:[#allocation62_spill] sm:$0xff] %v4834_v5  ;;  %6191 = vst [vmem:[#allocation63_spill] sm:$0xff] %v4837_v37  ;;  %v5955_v47 = vand.u32 4294901760, %v4834_v5  ;;  %v807_v9 = vand.u32 4294901760, %v672_v51  ;;  %v811_v0 = vand.u32 4294901760, %v674_v20  ;;  %v5960_v27 = vand.u32 4294901760, %v4837_v37 }
  0x85   :  { %3269 = vmatpush1.bf16.msra.mxu1 %v3268_v17  ;;  %6189 = vst [vmem:[#allocation61_spill] sm:$0xff] %v4831_v50  ;;  %6192 = vst [vmem:[#allocation64_spill] sm:$0xff] %v4840_v56  ;;  %v5952_v17 = vand.u32 4294901760, %v4831_v50  ;;  %v5963_v21 = vand.u32 4294901760, %v4840_v56  ;;  %v813_v28 = vand.u32 4294901760, %v673_v8 }
  0x86   :  { %v1183_v41 = vsub.f32 %v4834_v5, %v5955_v47  ;;  %v4852_v4 = vsub.f32 %v672_v51, %v807_v9  ;;  %v4854_v55 = vsub.f32 %v674_v20, %v811_v0  ;;  %v1177_v12 = vsub.f32 %v4837_v37, %v5960_v27 }
  0x87   :  { %v1171_v32 = vsub.f32 %v4831_v50, %v5952_v17  ;;  %v1189_v34 = vsub.f32 %v4840_v56, %v5963_v21  ;;  %v4864_v52 = vsub.f32 %v673_v8, %v813_v28 }
  0x88   :  { %6193 = vst [vmem:[#allocation65_spill] sm:$0xff] %v4854_v55  ;;  %v1184_v50 = vand.u32 4294901760, %v1183_v41  ;;  %v5965_v47 = vand.u32 4294901760, %v4852_v4  ;;  %v5964_v51 = vand.u32 4294901760, %v4854_v55  ;;  %v1178_v20 = vand.u32 4294901760, %v1177_v12 }
  0x89   :  { %6194 = vst [vmem:[#allocation66_spill] sm:$0xff] %v4864_v52  ;;  %v1172_v17 = vand.u32 4294901760, %v1171_v32  ;;  %v1190_v5 = vand.u32 4294901760, %v1189_v34  ;;  %v5966_v27 = vand.u32 4294901760, %v4864_v52  ;;  %v6195_v41 = vand.u32 4294901760, %v4656_v23 }
  0x8a   :  { %v1195_v43 = vsub.f32 %v4852_v4, %v5965_v47  ;;  %v1207_v8 = vsub.f32 %v4854_v55, %v5964_v51  ;;  %v6196_v32 = vand.u32 4294901760, %v4675_v60  ;;  %v1201_v12 = vsub.f32 %v4862_v6, %v5969_v2  ;;  %v6224_v2 = vld [vmem:[#allocation33_spill] sm:$0xff] }
  0x8b   :  { %v3270_v37 = vpack.c.bf16 %v1184_v50, %v1172_v17  ;;  %v3272_v34 = vpack.c.bf16 %v1190_v5, %v1178_v20  ;;  %v1213_v50 = vsub.f32 %v4864_v52, %v5966_v27  ;;  %v6198_v17 = vand.u32 4294901760, %v4687_v14 }
  0x8c   :  { %v4880_v21 = vpack.c.bf16 %v6196_v32, %v6195_v41  ;;  %v6199_v51 = vand.u32 4294901760, %v4689_v61  ;;  %v1196_v23 = vand.u32 4294901760, %v1195_v43  ;;  %v1208_v60 = vand.u32 4294901760, %v1207_v8 }
  0x8d   :  { %3271 = vmatprep.subr.bf16.mxu1 %v3270_v37  ;;  %v1202_v5 = vand.u32 4294901760, %v1201_v12  ;;  %v1214_v20 = vand.u32 4294901760, %v1213_v50  ;;  %v6201_v32 = vand.u32 4294901760, %v4710_v22  ;;  %v6202_v37 = vand.u32 4294901760, %v4725_v62 }
  0x8e   :  { %6197 = vst [vmem:[#allocation67_spill] sm:$0xff] %v4880_v21  ;;  %v4892_v47 = vpack.c.bf16 %v6199_v51, %v6198_v17  ;;  %3199 = vmatprep.subr.bf16.mxu0 %v4880_v21  ;;  %3273 = vmatpush1.bf16.msra.mxu1 %v3272_v34  ;;  %v3274_v41 = vpack.c.bf16 %v1208_v60, %v1196_v23  ;;  %v6204_v61 = vand.u32 4294901760, %v4742_v36  ;;  %v6205_v51 = vand.u32 4294901760, %v4744_v54 }
  0x8f   :  { %v4900_v27 = vpack.c.bf16 %v6202_v37, %v6201_v32  ;;  %v3276_v14 = vpack.c.bf16 %v1214_v20, %v1202_v5  ;;  %v3278_v22 = vpack.c.bf16 %v3986_v29, %v3981_v25  ;;  %v6207_v62 = vand.u32 4294901760, %v4816_v10 }
  0x90   :  { %6200 = vst [vmem:[#allocation68_spill] sm:$0xff] %v4892_v47  ;;  %3201 = vmatpush1.bf16.msra.mxu0 %v4892_v47  ;;  %3275 = vmatprep.subr.bf16.mxu1 %v3274_v41  ;;  %v4906_v43 = vpack.c.bf16 %v6205_v51, %v6204_v61  ;;  %v4917_v36 = vpack.c.bf16 %v805_v11, %v801_v59  ;;  %v52_v12 = vlaneseq }
  0x91   :  { %6203 = vst [vmem:[#allocation69_spill] sm:$0xff] %v4900_v27  ;;  %3203 = vmatprep.subr.bf16.mxu0 %v4900_v27  ;;  %v4914_v8 = vpack.c.bf16 %v803_v39, %v6207_v62  ;;  %v4920_v54 = vpack.c.bf16 %v811_v0, %v807_v9  ;;  %v4923_v34 = vpack.c.bf16 %v813_v28, %v809_v33  ;;  %v50_v39 = vld [vmem:[%s5772_s2] sm:$0x3] }
  0x92   :  { %6206 = vst [vmem:[#allocation70_spill] sm:$0xff] %v4906_v43  ;;  %3277 = vmatpush1.bf16.msra.mxu1 %v3276_v14  ;;  %6209 = vst [vmem:[#allocation72_spill] sm:$0xff] %v4917_v36  ;;  %v4926_v50 = vshrl.u32 %v52_v12, 7  ;;  %v3280_v41 = vpack.c.bf16 %v3996_v31, %v3991_v30  ;;  %v3282_v37 = vpack.c.bf16 %v4007_v38, %v4001_v35 }
  0x93   :  { %6208 = vst [vmem:[#allocation71_spill] sm:$0xff] %v4914_v8  ;;  %3279 = vmatprep.subr.bf16.mxu1 %v3278_v22  ;;  %6210 = vst [vmem:[#allocation73_spill] sm:$0xff] %v4920_v54  ;;  %v3284_v51 = vpack.c.bf16 %v4027_v49, %v4013_v40  ;;  %v3286_v12 = vpack.c.bf16 %v4081_v15, %v4072_v57 }
  0x94   :  { %3205 = vmatpush1.bf16.msra.mxu0 %v4906_v43  ;;  %6211 = vst [vmem:[#allocation74_spill] sm:$0xff] %v4923_v34  ;;  %6212 = vst [vmem:[#allocation75_spill] sm:$0xff] %v4926_v50  ;;  %v5968_v10 = vsub.s32 0, %v4926_v50  ;;  %v5967_v59 = vsub.s32 1, %v4926_v50 }
  0x95   :  { %3207 = vmatprep.subr.bf16.mxu0 %v4914_v8 }
  0x96   :  { %v55_v9 = vrot.slane %v50_v39, %v5968_v10  ;;  %v59_v33 = vrot.slane %v50_v39, %v5967_v59  ;;  %v6222_v59 = vld [vmem:[#allocation30_spill] sm:$0xff] }
  0x98   :  { %3209 = vmatpush1.bf16.msra.mxu0 %v4917_v36 }
  0x99   :  { %3211 = vmatprep.subr.bf16.mxu0 %v4920_v54 }
  0x9c   :  { %3213 = vmatpush1.bf16.msra.mxu0 %v4923_v34 }
 0x11f   :  { %v604_v0 = vpop.f32.mrb[0].mxu0 }
 0x120   :  { %v3726_v11 = vadd.f32 %v604_v0, %v55_v9  ;;  %v606_v28 = vpop.f32.mrb[1].mxu0 }
 0x121   :  { %v3727_v17 = vadd.f32 %v606_v28, %v59_v33  ;;  %v3288_v33 = vpack.c.bf16 %v4107_v19, %v4098_v7  ;;  %v3292_v28 = vpack.c.bf16 %v4158_v63, %v4147_v18 }
 0x122   :  { %v609_v23 = vmax.f32 %v3726_v11, 0.0  ;;  %v3290_v11 = vpack.c.bf16 %v4128_v24, %v4112_v45 }
 0x123   :  { %v610_v60 = vmax.f32 %v3727_v17, 0.0  ;;  %v3294_v17 = vpack.c.bf16 %v4210_v48, %v4205_v26 }
 0x124   :  { %v4937_v5 = vand.u32 4294901760, %v609_v23 }
 0x125   :  { %v4939_v20 = vand.u32 4294901760, %v610_v60 }
 0x126   :  { %6213 = vst [vmem:[#allocation76_spill] sm:$0xff] %v4937_v5  ;;  %v4944_v32 = vsub.f32 %v609_v23, %v4937_v5  ;;  %v3296_v23 = vpack.c.bf16 %v4239_v13, %v4218_v44 }
 0x127   :  { %v4949_v14 = vsub.f32 %v610_v60, %v4939_v20  ;;  %1217 = vmatprep.mubr.f32.mxu1 %v4939_v20  ;;  %v3298_v60 = vpack.c.bf16 %v4261_v1, %v4256_v46 }
 0x128   :  { %v5970_v61 = vand.u32 4294901760, %v4944_v32  ;;  %1219 = vmatmul.mubr.f32.vlgmr.msra.gmra.mrb[0].mxu1 %v4937_v5  ;;  %v6228_v5 = vld [vmem:[#allocation39_spill] sm:$0xff] }
 0x129   :  { %3281 = vmatpush1.bf16.msra.mxu1 %v3280_v41  ;;  %1419 = vmatprep.mubr.f32.mxu1 %v4949_v14  ;;  %v5971_v22 = vand.u32 4294901760, %v4949_v14  ;;  %v3300_v41 = vpack.c.bf16 %v4286_v16, %v4281_v3 }
 0x12a   :  { %v824_v62 = vsub.f32 %v4944_v32, %v5970_v61  ;;  %3283 = vmatprep.subr.bf16.mxu1 %v3282_v37  ;;  %v3302_v37 = vpack.c.bf16 %v4336_v42, %v4329_v58 }
 0x12b   :  { %v818_v39 = vsub.f32 %v4949_v14, %v5971_v22  ;;  %v6226_v22 = vld [vmem:[#allocation35_spill] sm:$0xff] }
 0x12c   :  { %v825_v0 = vand.u32 4294901760, %v824_v62  ;;  %v6215_v62 = vld [vmem:[#allocation19_spill] sm:$0xff] }
 0x12d   :  { %3285 = vmatpush1.bf16.msra.mxu1 %v3284_v51  ;;  %v819_v9 = vand.u32 4294901760, %v818_v39  ;;  %v6214_v51 = vld [vmem:[#allocation18_spill] sm:$0xff]  ;;  %v6216_v39 = vld [vmem:[#allocation21_spill] sm:$0xff] }
 0x12e   :  { %3287 = vmatprep.subr.bf16.mxu1 %v3286_v12  ;;  %v3304_v12 = vpack.c.bf16 %v6215_v62, %v6214_v51 }
 0x12f   :  { %820 = vmatprep.mubr.f32.mxu0 %v819_v9  ;;  %v3306_v9 = vpack.c.bf16 %v6216_v39, %v4386_v53 }
 0x130   :  { %826 = vmatmul.mubr.f32.vlgmr.msra.gmra.mrb[2].mxu0 %v825_v0  ;;  %v6218_v0 = vld [vmem:[#allocation23_spill] sm:$0xff] }
 0x131   :  { %3289 = vmatpush1.bf16.msra.mxu1 %v3288_v33  ;;  %v6217_v33 = vld [vmem:[#allocation22_spill] sm:$0xff] }
 0x132   :  { %3291 = vmatprep.subr.bf16.mxu1 %v3290_v11  ;;  %v3308_v11 = vpack.c.bf16 %v6218_v0, %v6217_v33  ;;  %v6230_v33 = vld [vmem:[#allocation42_spill] sm:$0xff] }
 0x135   :  { %3293 = vmatpush1.bf16.msra.mxu1 %v3292_v28  ;;  %v6219_v28 = vld [vmem:[#allocation26_spill] sm:$0xff] }
 0x136   :  { %3295 = vmatprep.subr.bf16.mxu1 %v3294_v17  ;;  %v6220_v17 = vld [vmem:[#allocation27_spill] sm:$0xff] }
 0x139   :  { %3297 = vmatpush1.bf16.msra.mxu1 %v3296_v23  ;;  %v3310_v23 = vpack.c.bf16 %v6220_v17, %v6219_v28  ;;  %v6232_v28 = vld [vmem:[#allocation45_spill] sm:$0xff] }
 0x13a   :  { %3299 = vmatprep.subr.bf16.mxu1 %v3298_v60  ;;  %v6221_v60 = vld [vmem:[#allocation29_spill] sm:$0xff] }
 0x13b   :  { %v3312_v10 = vpack.c.bf16 %v6222_v59, %v6221_v60  ;;  %v6234_v60 = vld [vmem:[#allocation47_spill] sm:$0xff] }
 0x13d   :  { %3301 = vmatpush1.bf16.msra.mxu1 %v3300_v41  ;;  %v6223_v41 = vld [vmem:[#allocation32_spill] sm:$0xff] }
 0x13e   :  { %3303 = vmatprep.subr.bf16.mxu1 %v3302_v37  ;;  %v3314_v61 = vpack.c.bf16 %v6224_v2, %v6223_v41  ;;  %v6225_v37 = vld [vmem:[#allocation34_spill] sm:$0xff]  ;;  %v6236_v41 = vld [vmem:[#allocation51_spill] sm:$0xff] }
 0x13f   :  { %v3316_v50 = vpack.c.bf16 %v6226_v22, %v6225_v37  ;;  %v6238_v37 = vld [vmem:[#allocation54_spill] sm:$0xff] }
 0x141   :  { %3305 = vmatpush1.bf16.msra.mxu1 %v3304_v12  ;;  %v6227_v12 = vld [vmem:[#allocation38_spill] sm:$0xff] }
 0x142   :  { %3307 = vmatprep.subr.bf16.mxu1 %v3306_v9  ;;  %v3318_v0 = vpack.c.bf16 %v6228_v5, %v6227_v12  ;;  %v6229_v9 = vld [vmem:[#allocation41_spill] sm:$0xff] }
 0x143   :  { %v3320_v17 = vpack.c.bf16 %v6230_v33, %v6229_v9  ;;  %v6240_v12 = vld [vmem:[#allocation57_spill] sm:$0xff]  ;;  %v6242_v9 = vld [vmem:[#allocation59_spill] sm:$0xff] }
 0x145   :  { %3309 = vmatpush1.bf16.msra.mxu1 %v3308_v11  ;;  %v6231_v11 = vld [vmem:[#allocation44_spill] sm:$0xff] }
 0x146   :  { %3311 = vmatprep.subr.bf16.mxu1 %v3310_v23  ;;  %v3322_v59 = vpack.c.bf16 %v6232_v28, %v6231_v11  ;;  %v6233_v23 = vld [vmem:[#allocation46_spill] sm:$0xff] }
 0x147   :  { %v3324_v2 = vpack.c.bf16 %v6234_v60, %v6233_v23  ;;  %v6244_v11 = vld [vmem:[#allocation62_spill] sm:$0xff] }
 0x149   :  { %3313 = vmatpush1.bf16.msra.mxu1 %v3312_v10  ;;  %v6235_v10 = vld [vmem:[#allocation50_spill] sm:$0xff] }
 0x14a   :  { %3315 = vmatprep.subr.bf16.mxu1 %v3314_v61  ;;  %v3326_v22 = vpack.c.bf16 %v6236_v41, %v6235_v10  ;;  %v6237_v61 = vld [vmem:[#allocation53_spill] sm:$0xff] }
 0x14b   :  { %v3328_v5 = vpack.c.bf16 %v6238_v37, %v6237_v61 }
 0x14d   :  { %3317 = vmatpush1.bf16.msra.mxu1 %v3316_v50  ;;  %v6239_v50 = vld [vmem:[#allocation56_spill] sm:$0xff] }
 0x14e   :  { %3319 = vmatprep.subr.bf16.mxu1 %v3318_v0  ;;  %v3330_v33 = vpack.c.bf16 %v6240_v12, %v6239_v50  ;;  %v6241_v0 = vld [vmem:[#allocation58_spill] sm:$0xff] }
 0x14f   :  { %v3332_v28 = vpack.c.bf16 %v6242_v9, %v6241_v0 }
 0x151   :  { %3321 = vmatpush1.bf16.msra.mxu1 %v3320_v17  ;;  %v6243_v17 = vld [vmem:[#allocation61_spill] sm:$0xff] }
 0x152   :  { %3323 = vmatprep.subr.bf16.mxu1 %v3322_v59  ;;  %v3334_v60 = vpack.c.bf16 %v6244_v11, %v6243_v17  ;;  %v6245_v59 = vld [vmem:[#allocation63_spill] sm:$0xff] }
 0x153   :  { %v3336_v41 = vpack.c.bf16 %v4840_v56, %v6245_v59  ;;  %v6249_v56 = vld [vmem:[#allocation10_spill] sm:$0xff] }
 0x155   :  { %3325 = vmatpush1.bf16.msra.mxu1 %v3324_v2  ;;  %v3338_v2 = vpack.c.bf16 %v4854_v55, %v4852_v4  ;;  %v6251_v55 = vld [vmem:[#allocation12_spill] sm:$0xff] }
 0x156   :  { %3327 = vmatprep.subr.bf16.mxu1 %v3326_v22  ;;  %v3340_v22 = vpack.c.bf16 %v4864_v52, %v4862_v6  ;;  %v6253_v52 = vld [vmem:[#allocation14_spill] sm:$0xff] }
 0x159   :  { %3329 = vmatpush1.bf16.msra.mxu1 %v3328_v5  ;;  %v6246_v5 = vld [vmem:[#allocation8_spill] sm:$0xff] }
 0x15a   :  { %3331 = vmatprep.subr.bf16.mxu1 %v3330_v33  ;;  %v6247_v33 = vld [vmem:[#allocation9_spill] sm:$0xff] }
 0x15d   :  { %3333 = vmatpush1.bf16.msra.mxu1 %v3332_v28  ;;  %v6248_v28 = vand.u32 4294901760, %v4949_v14  ;;  %v6258_v14 = vld [vmem:[#allocation24_spill] sm:$0xff] }
 0x15e   :  { %3335 = vmatprep.subr.bf16.mxu1 %v3334_v60  ;;  %v6250_v60 = vld [vmem:[#allocation11_spill] sm:$0xff] }
 0x161   :  { %3337 = vmatpush1.bf16.msra.mxu1 %v3336_v41  ;;  %v6252_v41 = vld [vmem:[#allocation13_spill] sm:$0xff] }
 0x162   :  { %3339 = vmatprep.subr.bf16.mxu1 %v3338_v2  ;;  %v6254_v2 = vld [vmem:[#allocation15_spill] sm:$0xff] }
 0x165   :  { %3341 = vmatpush1.bf16.msra.mxu1 %v3340_v22  ;;  %v6255_v22 = vld [vmem:[#allocation16_spill] sm:$0xff] }
 0x166   :  { %3343 = vmatprep.subr.bf16.mxu1 %v6246_v5  ;;  %v6256_v5 = vld [vmem:[#allocation17_spill] sm:$0xff] }
 0x168   :  { %1422 = vmatmul.mubr.f32.vlgmr.msra.gmra.mrb[0].mxu1 %v4944_v32 }
 0x169   :  { %3345 = vmatpush1.bf16.msra.mxu1 %v6247_v33  ;;  %1559 = vmatprep.mubr.f32.mxu1 %v6248_v28  ;;  %v6257_v33 = vld [vmem:[#allocation20_spill] sm:$0xff]  ;;  %v6259_v28 = vld [vmem:[#allocation25_spill] sm:$0xff] }
 0x16a   :  { %3347 = vmatprep.subr.bf16.mxu1 %v6249_v56  ;;  %v6260_v56 = vld [vmem:[#allocation28_spill] sm:$0xff] }
 0x16d   :  { %3349 = vmatpush1.bf16.msra.mxu1 %v6250_v60  ;;  %v6261_v60 = vld [vmem:[#allocation31_spill] sm:$0xff] }
 0x16e   :  { %3351 = vmatprep.subr.bf16.mxu1 %v6251_v55  ;;  %v6262_v55 = vld [vmem:[#allocation36_spill] sm:$0xff] }
 0x171   :  { %3353 = vmatpush1.bf16.msra.mxu1 %v6252_v41  ;;  %v6263_v41 = vld [vmem:[#allocation37_spill] sm:$0xff] }
 0x172   :  { %3355 = vmatprep.subr.bf16.mxu1 %v6253_v52  ;;  %v6264_v52 = vld [vmem:[#allocation40_spill] sm:$0xff] }
 0x175   :  { %3357 = vmatpush1.bf16.msra.mxu1 %v6254_v2  ;;  %v6265_v2 = vld [vmem:[#allocation43_spill] sm:$0xff] }
 0x176   :  { %3359 = vmatprep.subr.bf16.mxu1 %v6255_v22  ;;  %v6266_v22 = vld [vmem:[#allocation48_spill] sm:$0xff] }
 0x179   :  { %3361 = vmatpush1.bf16.msra.mxu1 %v6256_v5  ;;  %v6267_v5 = vld [vmem:[#allocation49_spill] sm:$0xff] }
 0x17a   :  { %3363 = vmatprep.subr.bf16.mxu1 %v6257_v33  ;;  %v6268_v33 = vld [vmem:[#allocation52_spill] sm:$0xff] }
 0x17d   :  { %3365 = vmatpush1.bf16.msra.mxu1 %v6258_v14  ;;  %v6269_v14 = vld [vmem:[#allocation55_spill] sm:$0xff] }
 0x17e   :  { %3367 = vmatprep.subr.bf16.mxu1 %v6259_v28  ;;  %v6270_v28 = vld [vmem:[#allocation60_spill] sm:$0xff] }
 0x181   :  { %3369 = vmatpush1.bf16.msra.mxu1 %v6260_v56 }
 0x182   :  { %3371 = vmatprep.subr.bf16.mxu1 %v6261_v60 }
 0x185   :  { %3373 = vmatpush1.bf16.msra.mxu1 %v6262_v55 }
 0x186   :  { %3375 = vmatprep.subr.bf16.mxu1 %v6263_v41 }
 0x189   :  { %3377 = vmatpush1.bf16.msra.mxu1 %v6264_v52 }
 0x18a   :  { %3379 = vmatprep.subr.bf16.mxu1 %v6265_v2 }
 0x18d   :  { %3381 = vmatpush1.bf16.msra.mxu1 %v6266_v22 }
 0x18e   :  { %3383 = vmatprep.subr.bf16.mxu1 %v6267_v5 }
 0x191   :  { %3385 = vmatpush1.bf16.msra.mxu1 %v6268_v33  ;;  %v6271_v33 = vand.u32 4294901760, %v3981_v25  ;;  %v6278_v25 = vand.u32 4294901760, %v4013_v40  ;;  %v1973_v40 = vld [vmem:[%s5775_s5] sm:$0xff] }
 0x192   :  { %3387 = vmatprep.subr.bf16.mxu1 %v6269_v14  ;;  %v6272_v14 = vand.u32 4294901760, %v3986_v29  ;;  %v6279_v29 = vand.u32 4294901760, %v4027_v49  ;;  %v6282_v49 = vand.u32 4294901760, %v4098_v7  ;;  %v6284_v7 = vand.u32 4294901760, %v4112_v45 }
 0x194   :  { %v3406_v5 = vpack.c.bf16 %v6272_v14, %v6271_v33  ;;  %v3412_v33 = vpack.c.bf16 %v6279_v29, %v6278_v25  ;;  %v6280_v14 = vand.u32 4294901760, %v4072_v57  ;;  %v6283_v57 = vand.u32 4294901760, %v4107_v19 }
 0x195   :  { %3389 = vmatpush1.bf16.msra.mxu1 %v6270_v28  ;;  %v6285_v19 = vand.u32 4294901760, %v4128_v24 }
 0x196   :  { %3391 = vmatprep.subr.bf16.mxu1 %v4880_v21  ;;  %v6273_v21 = vand.u32 4294901760, %v3991_v30  ;;  %v6281_v30 = vand.u32 4294901760, %v4081_v15  ;;  %v3416_v15 = vpack.c.bf16 %v6283_v57, %v6282_v49 }
 0x199   :  { %3393 = vmatpush1.bf16.msra.mxu1 %v4892_v47  ;;  %v6274_v47 = vand.u32 4294901760, %v3996_v31  ;;  %v3414_v31 = vpack.c.bf16 %v6281_v30, %v6280_v14  ;;  %v1975_v14 = vld [vmem:[%s5775_s5 + $0x10] sm:$0xff]  ;;  %v1976_v30 = vld [vmem:[%s5775_s5 + $0x18] sm:$0xff] }
 0x19a   :  { %3395 = vmatprep.subr.bf16.mxu1 %v4900_v27 }
 0x19b   :  { %v3408_v27 = vpack.c.bf16 %v6274_v47, %v6273_v21 }
 0x19d   :  { %3397 = vmatpush1.bf16.msra.mxu1 %v4906_v43  ;;  %v6275_v43 = vand.u32 4294901760, %v4001_v35  ;;  %v1989_v35 = vld [vmem:[%s5775_s5 + $0x80] sm:$0xff] }
 0x19e   :  { %3399 = vmatprep.subr.bf16.mxu1 %v4914_v8  ;;  %v6276_v8 = vand.u32 4294901760, %v4007_v38  ;;  %v1990_v38 = vld [vmem:[%s5775_s5 + $0x88] sm:$0xff]  ;;  %v2061_v47 = vand.u32 4294901760, %v1989_v35 }
 0x19f   :  { %v2064_v21 = vand.u32 4294901760, %v1990_v38 }
 0x1a0   :  { %v5115_v45 = vsub.f32 %v1989_v35, %v2061_v47 }
 0x1a1   :  { %3401 = vmatpush1.bf16.msra.mxu1 %v4917_v36  ;;  %v3410_v36 = vpack.c.bf16 %v6276_v8, %v6275_v43  ;;  %v1974_v43 = vld [vmem:[%s5775_s5 + $0x8] sm:$0xff]  ;;  %v2013_v8 = vand.u32 4294901760, %v1973_v40  ;;  %v5113_v49 = vpack.c.bf16 %v2064_v21, %v2061_v47  ;;  %v5117_v24 = vsub.f32 %v1990_v38, %v2064_v21  ;;  %v1995_v47 = vld [vmem:[%s5775_s5 + $0xb0] sm:$0xff] }
 0x1a2   :  { %3403 = vmatprep.subr.bf16.mxu1 %v4920_v54  ;;  %v6277_v54 = vand.u32 4294901760, %v4944_v32  ;;  %v3418_v32 = vpack.c.bf16 %v6285_v19, %v6284_v7  ;;  %6287 = vst [vmem:[#allocation19_spill] sm:$0xff] %v5115_v45  ;;  %v1994_v7 = vld [vmem:[%s5775_s5 + $0xa8] sm:$0xff]  ;;  %v1977_v19 = vld [vmem:[%s5775_s5 + $0x20] sm:$0xff] }
 0x1a3   :  { %6286 = vst [vmem:[#allocation18_spill] sm:$0xff] %v5113_v49  ;;  %6288 = vst [vmem:[#allocation21_spill] sm:$0xff] %v5117_v24  ;;  %v5119_v57 = vsub.f32 %v1973_v40, %v2013_v8  ;;  %3535 = vmatprep.subr.bf16.mxu0 %v5113_v49  ;;  %v2022_v24 = vand.u32 4294901760, %v1976_v30  ;;  %v1980_v49 = vld [vmem:[%s5775_s5 + $0x38] sm:$0xff] }
 0x1a5   :  { %3405 = vmatpush1.bf16.msra.mxu1 %v4923_v34  ;;  %6289 = vst [vmem:[#allocation46_spill] sm:$0xff] %v5119_v57  ;;  %v1978_v34 = vld [vmem:[%s5775_s5 + $0x28] sm:$0xff]  ;;  %v2019_v57 = vand.u32 4294901760, %v1975_v14 }
 0x1a6   :  { %3407 = vmatprep.subr.bf16.mxu1 %v3406_v5  ;;  %v2016_v5 = vand.u32 4294901760, %v1974_v43 }
 0x1a8   :  { %1563 = vmatmul.mubr.f32.vlgmr.msra.gmra.mrb[0].mxu1 %v6277_v54  ;;  %v1991_v54 = vld [vmem:[%s5775_s5 + $0x90] sm:$0xff]  ;;  %v5130_v28 = vpack.c.bf16 %v2016_v5, %v2013_v8  ;;  %v5132_v35 = vsub.f32 %v1974_v43, %v2016_v5  ;;  %v2076_v43 = vand.u32 4294901760, %v1994_v7  ;;  %v2025_v8 = vand.u32 4294901760, %v1977_v19 }
 0x1a9   :  { %3409 = vmatpush1.bf16.msra.mxu1 %v3408_v27  ;;  %1826 = vmatprep.mubr.f32.mxu1 %v4939_v20  ;;  %v1992_v27 = vld [vmem:[%s5775_s5 + $0x98] sm:$0xff]  ;;  %v2067_v25 = vand.u32 4294901760, %v1991_v54  ;;  %v2028_v5 = vand.u32 4294901760, %v1978_v34 }
 0x1aa   :  { %3411 = vmatprep.subr.bf16.mxu1 %v3410_v36  ;;  %v2070_v29 = vand.u32 4294901760, %v1992_v27  ;;  %v1993_v36 = vld [vmem:[%s5775_s5 + $0xa0] sm:$0xff]  ;;  %6290 = vst [vmem:[#allocation50_spill] sm:$0xff] %v5130_v28  ;;  %6291 = vst [vmem:[#allocation53_spill] sm:$0xff] %v5132_v35  ;;  %3537 = vmatpush3.bf16.msra.mxu0 %v5130_v28  ;;  %v5171_v2 = vsub.f32 %v1977_v19, %v2025_v8 }
 0x1ab   :  { %v5136_v40 = vsub.f32 %v1991_v54, %v2067_v25  ;;  %v2073_v45 = vand.u32 4294901760, %v1993_v36  ;;  %v1996_v54 = vld [vmem:[%s5775_s5 + $0xb8] sm:$0xff] }
 0x1ac   :  { %v5134_v38 = vpack.c.bf16 %v2070_v29, %v2067_v25  ;;  %v5142_v21 = vsub.f32 %v1992_v27, %v2070_v29  ;;  %v2079_v25 = vand.u32 4294901760, %v1995_v47  ;;  %v5152_v27 = vpack.c.bf16 %v2022_v24, %v2019_v57 }
 0x1ad   :  { %6293 = vst [vmem:[#allocation56_spill] sm:$0xff] %v5136_v40  ;;  %3413 = vmatpush1.bf16.msra.mxu1 %v3412_v33  ;;  %v1979_v33 = vld [vmem:[%s5775_s5 + $0x30] sm:$0xff]  ;;  %v5154_v29 = vsub.f32 %v1975_v14, %v2019_v57  ;;  %v5158_v28 = vsub.f32 %v1993_v36, %v2073_v45  ;;  %v6296_v40 = vand.u32 4294901760, %v4158_v63  ;;  %v5167_v22 = vpack.c.bf16 %v2076_v43, %v2073_v45 }
 0x1ae   :  { %6292 = vst [vmem:[#allocation54_spill] sm:$0xff] %v5134_v38  ;;  %6294 = vst [vmem:[#allocation57_spill] sm:$0xff] %v5142_v21  ;;  %3415 = vmatprep.subr.bf16.mxu1 %v3414_v31  ;;  %3539 = vmatprep.subr.bf16.mxu0 %v5134_v38  ;;  %v5156_v31 = vsub.f32 %v1976_v30, %v2022_v24  ;;  %v6295_v21 = vand.u32 4294901760, %v4147_v18  ;;  %v5169_v38 = vsub.f32 %v1994_v7, %v2076_v43 }
 0x1af   :  { %6297 = vst [vmem:[#allocation58_spill] sm:$0xff] %v5167_v22  ;;  %v5173_v14 = vsub.f32 %v1978_v34, %v2028_v5  ;;  %v2082_v30 = vand.u32 4294901760, %v1996_v54  ;;  %v5175_v36 = vsub.f32 %v1995_v47, %v2079_v25  ;;  %v2031_v24 = vand.u32 4294901760, %v1979_v33  ;;  %3541 = vmatpush3.bf16.msra.mxu0 %v5152_v27 }
 0x1b0   :  { %v3420_v35 = vpack.c.bf16 %v6296_v40, %v6295_v21  ;;  %v6298_v57 = vand.u32 4294901760, %v4205_v26  ;;  %v6299_v18 = vand.u32 4294901760, %v4210_v48  ;;  %v5182_v45 = vpack.c.bf16 %v2028_v5, %v2025_v8  ;;  %3543 = vmatprep.subr.bf16.mxu0 %v5167_v22 }
 0x1b1   :  { %3417 = vmatpush1.bf16.msra.mxu1 %v3416_v15  ;;  %v2034_v7 = vand.u32 4294901760, %v1980_v49  ;;  %v5185_v15 = vpack.c.bf16 %v2082_v30, %v2079_v25  ;;  %v5187_v34 = vsub.f32 %v1996_v54, %v2082_v30  ;;  %v5189_v19 = vsub.f32 %v1979_v33, %v2031_v24  ;;  %v6318_v30 = vld [vmem:[#allocation22_spill] sm:$0xff] }
 0x1b2   :  { %3419 = vmatprep.subr.bf16.mxu1 %v3418_v32  ;;  %v3422_v63 = vpack.c.bf16 %v6299_v18, %v6298_v57  ;;  %6300 = vst [vmem:[#allocation59_spill] sm:$0xff] %v5182_v45  ;;  %v6305_v26 = vand.u32 4294901760, %v4218_v44  ;;  %v6306_v48 = vand.u32 4294901760, %v4239_v13  ;;  %v6307_v47 = vand.u32 4294901760, %v4256_v46  ;;  %v6322_v18 = vld [vmem:[#allocation26_spill] sm:$0xff] }
 0x1b3   :  { %6301 = vst [vmem:[#allocation61_spill] sm:$0xff] %v5185_v15  ;;  %6302 = vst [vmem:[#allocation62_spill] sm:$0xff] %v5187_v34  ;;  %v5191_v40 = vsub.f32 %v1980_v49, %v2034_v7  ;;  %v6308_v21 = vand.u32 4294901760, %v4261_v1  ;;  %3545 = vmatpush3.bf16.msra.mxu0 %v5182_v45  ;;  %v5202_v8 = vpack.c.bf16 %v2034_v7, %v2031_v24  ;;  %v6310_v49 = vand.u32 4294901760, %v4281_v3  ;;  %v6320_v24 = vld [vmem:[#allocation23_spill] sm:$0xff] }
 0x1b4   :  { %6303 = vst [vmem:[#allocation63_spill] sm:$0xff] %v5189_v19  ;;  %v3424_v32 = vpack.c.bf16 %v6306_v48, %v6305_v26  ;;  %3547 = vmatprep.subr.bf16.mxu0 %v5185_v15  ;;  %v6311_v44 = vand.u32 4294901760, %v4286_v16  ;;  %v6312_v13 = vand.u32 4294901760, %v4329_v58  ;;  %v6313_v46 = vand.u32 4294901760, %v4336_v42  ;;  %v6324_v7 = vld [vmem:[#allocation27_spill] sm:$0xff] }
 0x1b5   :  { %6304 = vst [vmem:[#allocation28_spill] sm:$0xff] %v5191_v40  ;;  %3421 = vmatpush1.bf16.msra.mxu1 %v3420_v35  ;;  %v3426_v43 = vpack.c.bf16 %v6308_v21, %v6307_v47  ;;  %6309 = vst [vmem:[#allocation31_spill] sm:$0xff] %v5202_v8  ;;  %v6314_v1 = vand.u32 4294901760, %v6214_v51  ;;  %v6315_v54 = vand.u32 4294901760, %v6215_v62  ;;  %v6316_v3 = vand.u32 4294901760, %v4386_v53  ;;  %v6326_v62 = vld [vmem:[#allocation29_spill] sm:$0xff] }
 0x1b6   :  { %3423 = vmatprep.subr.bf16.mxu1 %v3422_v63  ;;  %v3428_v35 = vpack.c.bf16 %v6311_v44, %v6310_v49  ;;  %v3430_v5 = vpack.c.bf16 %v6313_v46, %v6312_v13  ;;  %v6317_v16 = vand.u32 4294901760, %v6216_v39  ;;  %v6319_v58 = vand.u32 4294901760, %v6318_v30  ;;  %v6330_v39 = vld [vmem:[#allocation32_spill] sm:$0xff]  ;;  %v6336_v46 = vld [vmem:[#allocation35_spill] sm:$0xff]  ;;  %v6342_v30 = vld [vmem:[#allocation41_spill] sm:$0xff] }
 0x1b7   :  { %3549 = vmatpush3.bf16.msra.mxu0 %v5202_v8  ;;  %v3432_v25 = vpack.c.bf16 %v6315_v54, %v6314_v1  ;;  %v6321_v42 = vand.u32 4294901760, %v6320_v24  ;;  %v6323_v63 = vand.u32 4294901760, %v6322_v18  ;;  %v6325_v51 = vand.u32 4294901760, %v6324_v7  ;;  %v6338_v54 = vld [vmem:[#allocation38_spill] sm:$0xff]  ;;  %v6346_v18 = vld [vmem:[#allocation44_spill] sm:$0xff]  ;;  %v6348_v7 = vld [vmem:[#allocation45_spill] sm:$0xff] }
 0x1b8   :  { %v3434_v33 = vpack.c.bf16 %v6317_v16, %v6316_v3  ;;  %v6327_v48 = vand.u32 4294901760, %v6326_v62  ;;  %v6331_v21 = vand.u32 4294901760, %v6330_v39  ;;  %v6340_v3 = vld [vmem:[#allocation39_spill] sm:$0xff]  ;;  %v6344_v24 = vld [vmem:[#allocation42_spill] sm:$0xff]  ;;  %v6350_v62 = vand.u32 4294901760, %v6233_v23 }
 0x1b9   :  { %3425 = vmatpush1.bf16.msra.mxu1 %v3424_v32  ;;  %v3436_v57 = vpack.c.bf16 %v6321_v42, %v6319_v58  ;;  %v3438_v26 = vpack.c.bf16 %v6325_v51, %v6323_v63  ;;  %v6328_v32 = vld [vmem:[#allocation30_spill] sm:$0xff]  ;;  %v6341_v16 = vand.u32 4294901760, %v6340_v3  ;;  %v6343_v58 = vand.u32 4294901760, %v6342_v30  ;;  %v6354_v39 = vld [vmem:[#allocation51_spill] sm:$0xff]  ;;  %v6365_v3 = vld [vmem:[#allocation64_spill] sm:$0xff] }
 0x1ba   :  { %3427 = vmatprep.subr.bf16.mxu1 %v3426_v43  ;;  %v6329_v53 = vand.u32 4294901760, %v6328_v32  ;;  %v6332_v43 = vld [vmem:[#allocation33_spill] sm:$0xff]  ;;  %v6345_v42 = vand.u32 4294901760, %v6344_v24  ;;  %v6347_v63 = vand.u32 4294901760, %v6346_v18  ;;  %v6349_v51 = vand.u32 4294901760, %v6348_v7  ;;  %v6378_v18 = vld [vmem:[#allocation12_spill] sm:$0xff] }
 0x1bb   :  { %v6333_v49 = vand.u32 4294901760, %v6332_v43  ;;  %v6359_v23 = vand.u32 4294901760, %v6240_v12  ;;  %v6367_v12 = vand.u32 4294901760, %v4852_v4  ;;  %v6376_v4 = vld [vmem:[#allocation10_spill] sm:$0xff]  ;;  %v6381_v7 = vld [vmem:[#allocation15_spill] sm:$0xff] }
 0x1bc   :  { %v3440_v47 = vpack.c.bf16 %v6329_v53, %v6327_v48  ;;  %v6351_v48 = vld [vmem:[#allocation47_spill] sm:$0xff] }
 0x1bd   :  { %3429 = vmatpush1.bf16.msra.mxu1 %v3428_v35  ;;  %v3442_v44 = vpack.c.bf16 %v6333_v49, %v6331_v21  ;;  %v6334_v35 = vld [vmem:[#allocation34_spill] sm:$0xff]  ;;  %v6352_v32 = vand.u32 4294901760, %v6351_v48  ;;  %v6355_v21 = vand.u32 4294901760, %v6354_v39  ;;  %v6356_v49 = vand.u32 4294901760, %v6237_v61  ;;  %v6385_v48 = vld [vmem:[#allocation24_spill] sm:$0xff] }
 0x1be   :  { %3431 = vmatprep.subr.bf16.mxu1 %v3430_v5  ;;  %v6335_v13 = vand.u32 4294901760, %v6334_v35  ;;  %v6337_v5 = vand.u32 4294901760, %v6336_v46  ;;  %v6363_v61 = vand.u32 4294901760, %v6244_v11  ;;  %v6373_v11 = vld [vmem:[#allocation8_spill] sm:$0xff] }
 0x1bf   :  { %v3452_v53 = vpack.c.bf16 %v6352_v32, %v6350_v62  ;;  %v6384_v62 = vld [vmem:[#allocation20_spill] sm:$0xff] }
 0x1c0   :  { %v3444_v1 = vpack.c.bf16 %v6337_v5, %v6335_v13  ;;  %v6358_v13 = vand.u32 4294901760, %v6239_v50  ;;  %v6360_v5 = vand.u32 4294901760, %v6241_v0  ;;  %v6366_v50 = vand.u32 4294901760, %v6365_v3  ;;  %v6388_v39 = vld [vmem:[#allocation48_spill] sm:$0xff] }
 0x1c1   :  { %3433 = vmatpush1.bf16.msra.mxu1 %v3432_v25  ;;  %v6339_v25 = vand.u32 4294901760, %v6338_v54  ;;  %v6362_v54 = vand.u32 4294901760, %v6243_v17 }
 0x1c2   :  { %3435 = vmatprep.subr.bf16.mxu1 %v3434_v33  ;;  %v3458_v46 = vpack.c.bf16 %v6359_v23, %v6358_v13  ;;  %v6399_v13 = vld [vmem:[#allocation73_spill] sm:$0xff]  ;;  %v6400_v23 = vld [vmem:[#allocation74_spill] sm:$0xff] }
 0x1c3   :  { %v3446_v33 = vpack.c.bf16 %v6341_v16, %v6339_v25  ;;  %v3462_v25 = vpack.c.bf16 %v6363_v61, %v6362_v54  ;;  %v1981_v54 = vld [vmem:[%s5775_s5 + $0x40] sm:$0xff]  ;;  %v1982_v61 = vld [vmem:[%s5775_s5 + $0x48] sm:$0xff] }
 0x1c5   :  { %3437 = vmatpush1.bf16.msra.mxu1 %v3436_v57  ;;  %v3448_v57 = vpack.c.bf16 %v6345_v42, %v6343_v58  ;;  %v6371_v58 = vld [vmem:[#allocation66_spill] sm:$0xff]  ;;  %v6375_v42 = vld [vmem:[#allocation9_spill] sm:$0xff] }
 0x1c6   :  { %3439 = vmatprep.subr.bf16.mxu1 %v3438_v26  ;;  %v3450_v26 = vpack.c.bf16 %v6349_v51, %v6347_v63  ;;  %v6372_v17 = vand.u32 4294901760, %v6371_v58  ;;  %v6380_v63 = vld [vmem:[#allocation14_spill] sm:$0xff]  ;;  %v6382_v51 = vld [vmem:[#allocation16_spill] sm:$0xff] }
 0x1c9   :  { %3441 = vmatpush1.bf16.msra.mxu1 %v3440_v47  ;;  %v6353_v47 = vand.u32 4294901760, %v6235_v10  ;;  %v6361_v10 = vand.u32 4294901760, %v6242_v9  ;;  %v6370_v9 = vand.u32 4294901760, %v4862_v6  ;;  %v6379_v6 = vld [vmem:[#allocation13_spill] sm:$0xff] }
 0x1ca   :  { %3443 = vmatprep.subr.bf16.mxu1 %v3442_v44  ;;  %v6357_v44 = vand.u32 4294901760, %v6238_v37  ;;  %v6364_v37 = vand.u32 4294901760, %v6245_v59  ;;  %v6374_v59 = vld [vmem:[#allocation76_spill] sm:$0xff] }
 0x1cb   :  { %v3454_v43 = vpack.c.bf16 %v6355_v21, %v6353_v47  ;;  %v3468_v24 = vpack.c.bf16 %v6372_v17, %v6370_v9  ;;  %v6387_v47 = vld [vmem:[#allocation43_spill] sm:$0xff]  ;;  %v6389_v21 = vld [vmem:[#allocation49_spill] sm:$0xff]  ;;  %v1984_v9 = vld [vmem:[%s5775_s5 + $0x58] sm:$0xff] }
 0x1cc   :  { %v3456_v35 = vpack.c.bf16 %v6357_v44, %v6356_v49  ;;  %v3464_v16 = vpack.c.bf16 %v6366_v50, %v6364_v37  ;;  %v6393_v49 = vld [vmem:[#allocation67_spill] sm:$0xff]  ;;  %v6394_v44 = vld [vmem:[#allocation68_spill] sm:$0xff]  ;;  %v2040_v37 = vand.u32 4294901760, %v1982_v61  ;;  %v2046_v17 = vand.u32 4294901760, %v1984_v9 }
 0x1cd   :  { %3445 = vmatpush1.bf16.msra.mxu1 %v3444_v1  ;;  %v3460_v1 = vpack.c.bf16 %v6361_v10, %v6360_v5  ;;  %v1998_v5 = vld [vmem:[%s5775_s5 + $0xc8] sm:$0xff] }
 0x1ce   :  { %3447 = vmatprep.subr.bf16.mxu1 %v3446_v33  ;;  %v6368_v33 = vld [vmem:[#allocation65_spill] sm:$0xff] }
 0x1cf   :  { %v6369_v0 = vand.u32 4294901760, %v6368_v33 }
 0x1d1   :  { %3449 = vmatpush1.bf16.msra.mxu1 %v3448_v57  ;;  %v3466_v30 = vpack.c.bf16 %v6369_v0, %v6367_v12  ;;  %v6377_v57 = vld [vmem:[#allocation11_spill] sm:$0xff]  ;;  %v2000_v12 = vld [vmem:[%s5775_s5 + $0xd8] sm:$0xff] }
 0x1d2   :  { %3451 = vmatprep.subr.bf16.mxu1 %v3450_v26  ;;  %v6383_v26 = vld [vmem:[#allocation17_spill] sm:$0xff]  ;;  %v2094_v0 = vand.u32 4294901760, %v2000_v12 }
 0x1d4   :  { %v5417_v8 = vsub.f32 %v2000_v12, %v2094_v0 }
 0x1d5   :  { %3453 = vmatpush1.bf16.msra.mxu1 %v3452_v53 }
 0x1d6   :  { %3455 = vmatprep.subr.bf16.mxu1 %v3454_v43  ;;  %v6390_v43 = vld [vmem:[#allocation52_spill] sm:$0xff]  ;;  %6417 = vst [vmem:[#allocation35_spill] sm:$0xff] %v5417_v8 }
 0x1d9   :  { %3457 = vmatpush1.bf16.msra.mxu1 %v3456_v35  ;;  %v6398_v35 = vld [vmem:[#allocation72_spill] sm:$0xff] }
 0x1da   :  { %3459 = vmatprep.subr.bf16.mxu1 %v3458_v46  ;;  %v1997_v46 = vld [vmem:[%s5775_s5 + $0xc0] sm:$0xff] }
 0x1db   :  { %v2085_v10 = vand.u32 4294901760, %v1997_v46 }
 0x1dd   :  { %3461 = vmatpush1.bf16.msra.mxu1 %v3460_v1  ;;  %v2088_v1 = vand.u32 4294901760, %v1998_v5 }
 0x1de   :  { %3463 = vmatprep.subr.bf16.mxu1 %v3462_v25  ;;  %v2037_v25 = vand.u32 4294901760, %v1981_v54 }
 0x1df   :  { %v5341_v3 = vpack.c.bf16 %v2088_v1, %v2085_v10 }
 0x1e0   :  { %v5343_v50 = vpack.c.bf16 %v2040_v37, %v2037_v25 }
 0x1e1   :  { %3465 = vmatpush1.bf16.msra.mxu1 %v3464_v16  ;;  %6401 = vst [vmem:[#allocation36_spill] sm:$0xff] %v5341_v3  ;;  %v1999_v16 = vld [vmem:[%s5775_s5 + $0xd0] sm:$0xff]  ;;  %3551 = vmatprep.subr.bf16.mxu0 %v5341_v3  ;;  %v5413_v3 = vsub.f32 %v1982_v61, %v2040_v37 }
 0x1e2   :  { %3467 = vmatprep.subr.bf16.mxu1 %v3466_v30  ;;  %6402 = vst [vmem:[#allocation37_spill] sm:$0xff] %v5343_v50  ;;  %v2091_v33 = vand.u32 4294901760, %v1999_v16  ;;  %v1983_v30 = vld [vmem:[%s5775_s5 + $0x50] sm:$0xff]  ;;  %3553 = vmatpush3.bf16.msra.mxu0 %v5343_v50  ;;  %v5409_v50 = vsub.f32 %v1998_v5, %v2088_v1 }
 0x1e3   :  { %v2043_v58 = vand.u32 4294901760, %v1983_v30  ;;  %6415 = vst [vmem:[#allocation33_spill] sm:$0xff] %v5413_v3 }
 0x1e4   :  { %6413 = vst [vmem:[#allocation30_spill] sm:$0xff] %v5409_v50 }
 0x1e5   :  { %3469 = vmatpush1.bf16.msra.mxu1 %v3468_v24  ;;  %v5359_v24 = vpack.c.bf16 %v2094_v0, %v2091_v33  ;;  %v5419_v15 = vsub.f32 %v1983_v30, %v2043_v58 }
 0x1e6   :  { %3471 = vmatprep.subr.bf16.mxu1 %v6373_v11  ;;  %v5361_v11 = vpack.c.bf16 %v2046_v17, %v2043_v58 }
 0x1e7   :  { %6403 = vst [vmem:[#allocation40_spill] sm:$0xff] %v5359_v24  ;;  %3555 = vmatprep.subr.bf16.mxu0 %v5359_v24  ;;  %v5407_v24 = vsub.f32 %v1997_v46, %v2085_v10  ;;  %6418 = vst [vmem:[#allocation38_spill] sm:$0xff] %v5419_v15 }
 0x1e8   :  { %1828 = vmatmul.mubr.f32.vlgmr.msra.gmra.mrb[0].mxu1 %v6374_v59  ;;  %6404 = vst [vmem:[#allocation22_spill] sm:$0xff] %v5361_v11  ;;  %3557 = vmatpush3.bf16.msra.mxu0 %v5361_v11 }
 0x1e9   :  { %3473 = vmatpush1.bf16.msra.mxu1 %v6375_v42  ;;  %1963 = vmatprep.mubr.f32.mxu1 %v4939_v20  ;;  %v6386_v20 = vld [vmem:[#allocation25_spill] sm:$0xff]  ;;  %v2002_v42 = vld [vmem:[%s5775_s5 + $0xe8] sm:$0xff]  ;;  %6412 = vst [vmem:[#allocation29_spill] sm:$0xff] %v5407_v24 }
 0x1ea   :  { %3475 = vmatprep.subr.bf16.mxu1 %v6376_v4 }
 0x1ed   :  { %3477 = vmatpush1.bf16.msra.mxu1 %v6377_v57  ;;  %v2100_v57 = vand.u32 4294901760, %v2002_v42 }
 0x1ee   :  { %3479 = vmatprep.subr.bf16.mxu1 %v6378_v18  ;;  %v1985_v18 = vld [vmem:[%s5775_s5 + $0x60] sm:$0xff] }
 0x1ef   :  { %v5426_v46 = vsub.f32 %v2002_v42, %v2100_v57  ;;  %v6025_v42 = vand.u32 4294901760, %v5154_v29 }
 0x1f1   :  { %3481 = vmatpush1.bf16.msra.mxu1 %v6379_v6  ;;  %v1986_v6 = vld [vmem:[%s5775_s5 + $0x68] sm:$0xff]  ;;  %6421 = vst [vmem:[#allocation42_spill] sm:$0xff] %v5426_v46 }
 0x1f2   :  { %3483 = vmatprep.subr.bf16.mxu1 %v6380_v63  ;;  %v2049_v63 = vand.u32 4294901760, %v1985_v18 }
 0x1f4   :  { %v5428_v5 = vsub.f32 %v1985_v18, %v2049_v63  ;;  %v6024_v18 = vand.u32 4294901760, %v5156_v31 }
 0x1f5   :  { %3485 = vmatpush1.bf16.msra.mxu1 %v6381_v7  ;;  %v2052_v7 = vand.u32 4294901760, %v1986_v6 }
 0x1f6   :  { %3487 = vmatprep.subr.bf16.mxu1 %v6382_v51  ;;  %6422 = vst [vmem:[#allocation44_spill] sm:$0xff] %v5428_v5 }
 0x1f7   :  { %v5430_v10 = vsub.f32 %v1986_v6, %v2052_v7  ;;  %v6020_v6 = vand.u32 4294901760, %v5158_v28 }
 0x1f9   :  { %3489 = vmatpush1.bf16.msra.mxu1 %v6383_v26  ;;  %v5379_v26 = vpack.c.bf16 %v2052_v7, %v2049_v63  ;;  %6423 = vst [vmem:[#allocation45_spill] sm:$0xff] %v5430_v10 }
 0x1fa   :  { %3491 = vmatprep.subr.bf16.mxu1 %v6384_v62  ;;  %v2003_v62 = vld [vmem:[%s5775_s5 + $0xf0] sm:$0xff] }
 0x1fb   :  { %6406 = vst [vmem:[#allocation26_spill] sm:$0xff] %v5379_v26 }
 0x1fd   :  { %3493 = vmatpush1.bf16.msra.mxu1 %v6385_v48  ;;  %v2004_v48 = vld [vmem:[%s5775_s5 + $0xf8] sm:$0xff] }
 0x1fe   :  { %3495 = vmatprep.subr.bf16.mxu1 %v6386_v20  ;;  %v2103_v20 = vand.u32 4294901760, %v2003_v62 }
 0x200   :  { %v5432_v1 = vsub.f32 %v2003_v62, %v2103_v20 }
 0x201   :  { %3497 = vmatpush1.bf16.msra.mxu1 %v6260_v56  ;;  %v6391_v56 = vld [vmem:[#allocation55_spill] sm:$0xff] }
 0x202   :  { %3499 = vmatprep.subr.bf16.mxu1 %v6261_v60  ;;  %v6392_v60 = vld [vmem:[#allocation60_spill] sm:$0xff]  ;;  %6424 = vst [vmem:[#allocation47_spill] sm:$0xff] %v5432_v1 }
 0x203   :  { %v5307_v32 = vpop.f32.mrb[2].mxu0 }
 0x204   :  { %v5309_v53 = vpop.f32.mrb[3].mxu0 }
 0x205   :  { %3501 = vmatpush1.bf16.msra.mxu1 %v6262_v55  ;;  %v6395_v55 = vld [vmem:[#allocation69_spill] sm:$0xff] }
 0x206   :  { %3503 = vmatprep.subr.bf16.mxu1 %v6263_v41  ;;  %v6396_v41 = vld [vmem:[#allocation70_spill] sm:$0xff] }
 0x209   :  { %3505 = vmatpush1.bf16.msra.mxu1 %v6264_v52  ;;  %v6397_v52 = vld [vmem:[#allocation71_spill] sm:$0xff] }
 0x20a   :  { %3507 = vmatprep.subr.bf16.mxu1 %v6387_v47  ;;  %v2106_v47 = vand.u32 4294901760, %v2004_v48 }
 0x20d   :  { %3509 = vmatpush1.bf16.msra.mxu1 %v6388_v39  ;;  %v1987_v39 = vld [vmem:[%s5775_s5 + $0x70] sm:$0xff] }
 0x20e   :  { %3511 = vmatprep.subr.bf16.mxu1 %v6389_v21  ;;  %v1988_v21 = vld [vmem:[%s5775_s5 + $0x78] sm:$0xff] }
 0x211   :  { %3513 = vmatpush1.bf16.msra.mxu1 %v6390_v43  ;;  %v6407_v43 = vld [vmem:[#allocation19_spill] sm:$0xff] }
 0x212   :  { %3515 = vmatprep.subr.bf16.mxu1 %v6391_v56  ;;  %v6015_v56 = vand.u32 4294901760, %v6407_v43 }
 0x215   :  { %3517 = vmatpush1.bf16.msra.mxu1 %v6392_v60  ;;  %v6408_v60 = vld [vmem:[#allocation21_spill] sm:$0xff] }
 0x216   :  { %3519 = vmatprep.subr.bf16.mxu1 %v6393_v49  ;;  %v6016_v49 = vand.u32 4294901760, %v6408_v60 }
 0x219   :  { %3521 = vmatpush1.bf16.msra.mxu1 %v6394_v44  ;;  %v2055_v44 = vand.u32 4294901760, %v1987_v39 }
 0x21a   :  { %3523 = vmatprep.subr.bf16.mxu1 %v6395_v55  ;;  %v2058_v55 = vand.u32 4294901760, %v1988_v21 }
 0x21c   :  { %v5436_v61 = vpack.c.bf16 %v2058_v55, %v2055_v44  ;;  %v5440_v37 = vsub.f32 %v1988_v21, %v2058_v55  ;;  %v6017_v21 = vand.u32 4294901760, %v5171_v2 }
 0x21d   :  { %3525 = vmatpush1.bf16.msra.mxu1 %v6396_v41  ;;  %v6409_v41 = vld [vmem:[#allocation46_spill] sm:$0xff] }
 0x21e   :  { %3527 = vmatprep.subr.bf16.mxu1 %v6397_v52  ;;  %v5415_v52 = vsub.f32 %v1999_v16, %v2091_v33  ;;  %6426 = vst [vmem:[#allocation64_spill] sm:$0xff] %v5436_v61  ;;  %6428 = vst [vmem:[#allocation66_spill] sm:$0xff] %v5440_v37  ;;  %v6429_v33 = vand.u32 4294901760, %v6409_v41 }
 0x220   :  { %6416 = vst [vmem:[#allocation34_spill] sm:$0xff] %v5415_v52  ;;  %v2128_v0 = vsub.f32 %v6409_v41, %v6429_v33 }
 0x221   :  { %3529 = vmatpush1.bf16.msra.mxu1 %v6398_v35  ;;  %v5398_v35 = vpack.c.bf16 %v2106_v47, %v2103_v20  ;;  %v2149_v20 = vsub.f32 %v5156_v31, %v6024_v18 }
 0x222   :  { %3531 = vmatprep.subr.bf16.mxu1 %v6399_v13  ;;  %v2240_v13 = vsub.f32 %v6407_v43, %v6015_v56  ;;  %v5421_v56 = vsub.f32 %v1984_v9, %v2046_v17  ;;  %v6430_v9 = vld [vmem:[#allocation56_spill] sm:$0xff]  ;;  %v6431_v17 = vld [vmem:[#allocation57_spill] sm:$0xff] }
 0x223   :  { %6410 = vst [vmem:[#allocation27_spill] sm:$0xff] %v5398_v35  ;;  %v6033_v58 = vand.u32 4294901760, %v6430_v9 }
 0x224   :  { %6419 = vst [vmem:[#allocation39_spill] sm:$0xff] %v5421_v56  ;;  %v2241_v16 = vand.u32 4294901760, %v2240_v13 }
 0x225   :  { %3533 = vmatpush1.bf16.msra.mxu1 %v6400_v23  ;;  %v2247_v23 = vsub.f32 %v6408_v60, %v6016_v49  ;;  %v2254_v7 = vsub.f32 %v6430_v9, %v6033_v58  ;;  %v6044_v58 = vand.u32 4294901760, %v5428_v5 }
 0x227   :  { %v2248_v12 = vand.u32 4294901760, %v2247_v23  ;;  %v2255_v55 = vand.u32 4294901760, %v2254_v7 }
 0x228   :  { %1965 = vmatmul.mubr.f32.vlgmr.msra.gmra.mrb[0].mxu1 %v6374_v59  ;;  %v2001_v59 = vld [vmem:[%s5775_s5 + $0xe0] sm:$0xff] }
 0x229   :  { %v2097_v4 = vand.u32 4294901760, %v2001_v59 }
 0x22b   :  { %v5377_v51 = vpack.c.bf16 %v2100_v57, %v2097_v4  ;;  %v5424_v49 = vsub.f32 %v2001_v59, %v2097_v4  ;;  %v6028_v59 = vand.u32 4294901760, %v6431_v17  ;;  %v3566_v4 = vpack.c.bf16 %v2248_v12, %v2241_v16 }
 0x22c   :  { %v2129_v57 = vand.u32 4294901760, %v2128_v0  ;;  %v2150_v16 = vand.u32 4294901760, %v2149_v20  ;;  %v2156_v0 = vsub.f32 %v5171_v2, %v6017_v21  ;;  %v6023_v20 = vand.u32 4294901760, %v5189_v19 }
 0x22d   :  { %6405 = vst [vmem:[#allocation23_spill] sm:$0xff] %v5377_v51  ;;  %3559 = vmatprep.subr.bf16.mxu0 %v5377_v51  ;;  %v6411_v51 = vld [vmem:[#allocation53_spill] sm:$0xff]  ;;  %6420 = vst [vmem:[#allocation41_spill] sm:$0xff] %v5424_v49  ;;  %v2261_v62 = vsub.f32 %v6431_v17, %v6028_v59  ;;  %v6026_v21 = vand.u32 4294901760, %v5191_v40 }
 0x22e   :  { %3561 = vmatpush3.bf16.msra.mxu0 %v5379_v26  ;;  %v6037_v11 = vand.u32 4294901760, %v6411_v51  ;;  %v5411_v26 = vsub.f32 %v1981_v54, %v2037_v25  ;;  %v5434_v54 = vsub.f32 %v2004_v48, %v2106_v47  ;;  %v5438_v25 = vsub.f32 %v1987_v39, %v2055_v44 }
 0x22f   :  { %3563 = vmatprep.subr.bf16.mxu0 %v5398_v35  ;;  %v2142_v48 = vsub.f32 %v5154_v29, %v6025_v42  ;;  %v2268_v47 = vsub.f32 %v5158_v28, %v6020_v6  ;;  %v6019_v39 = vand.u32 4294901760, %v5169_v38  ;;  %v2262_v13 = vand.u32 4294901760, %v2261_v62 }
 0x230   :  { %6414 = vst [vmem:[#allocation32_spill] sm:$0xff] %v5411_v26  ;;  %6425 = vst [vmem:[#allocation51_spill] sm:$0xff] %v5434_v54  ;;  %v2135_v30 = vsub.f32 %v6411_v51, %v6037_v11 }
 0x231   :  { %6427 = vst [vmem:[#allocation65_spill] sm:$0xff] %v5438_v25  ;;  %v2143_v23 = vand.u32 4294901760, %v2142_v48  ;;  %v2269_v12 = vand.u32 4294901760, %v2268_v47  ;;  %v2275_v33 = vsub.f32 %v5169_v38, %v6019_v39  ;;  %v2157_v48 = vand.u32 4294901760, %v2156_v0 }
 0x232   :  { %3565 = vmatpush3.bf16.msra.mxu0 %v5436_v61  ;;  %v2136_v63 = vand.u32 4294901760, %v2135_v30  ;;  %v5479_v30 = vpack.c.bf16 %v2262_v13, %v2255_v55  ;;  %v6032_v0 = vand.u32 4294901760, %v5409_v50  ;;  %v6050_v61 = vand.u32 4294901760, %v5432_v1 }
 0x233   :  { %3567 = vmatprep.subr.bf16.mxu0 %v3566_v4  ;;  %v6018_v4 = vand.u32 4294901760, %v5173_v14  ;;  %v5484_v7 = vpack.c.bf16 %v2150_v16, %v2143_v23  ;;  %v2276_v62 = vand.u32 4294901760, %v2275_v33  ;;  %v2170_v16 = vsub.f32 %v5189_v19, %v6023_v20 }
 0x234   :  { %v5471_v44 = vpack.c.bf16 %v2136_v63, %v2129_v57  ;;  %v6021_v57 = vand.u32 4294901760, %v5175_v36  ;;  %v6022_v63 = vand.u32 4294901760, %v5187_v34  ;;  %v6027_v33 = vand.u32 4294901760, %v5407_v24 }
 0x235   :  { %v2163_v47 = vsub.f32 %v5173_v14, %v6018_v4  ;;  %v5497_v23 = vpack.c.bf16 %v2276_v62, %v2269_v12  ;;  %v2303_v62 = vsub.f32 %v5409_v50, %v6032_v0  ;;  %v6029_v20 = vand.u32 4294901760, %v5411_v26 }
 0x236   :  { %v2282_v55 = vsub.f32 %v5175_v36, %v6021_v57  ;;  %v2289_v13 = vsub.f32 %v5187_v34, %v6022_v63  ;;  %v2177_v57 = vsub.f32 %v5191_v40, %v6026_v21  ;;  %v2171_v63 = vand.u32 4294901760, %v2170_v16 }
 0x237   :  { %v2164_v4 = vand.u32 4294901760, %v2163_v47  ;;  %v2296_v12 = vsub.f32 %v5407_v24, %v6027_v33  ;;  %v2304_v21 = vand.u32 4294901760, %v2303_v62  ;;  %v2184_v16 = vsub.f32 %v5411_v26, %v6029_v20 }
 0x238   :  { %v2283_v39 = vand.u32 4294901760, %v2282_v55  ;;  %v2290_v6 = vand.u32 4294901760, %v2289_v13  ;;  %v2178_v55 = vand.u32 4294901760, %v2177_v57  ;;  %v6030_v13 = vand.u32 4294901760, %v5413_v3 }
 0x239   :  { %v5514_v18 = vpack.c.bf16 %v2164_v4, %v2157_v48  ;;  %v2297_v42 = vand.u32 4294901760, %v2296_v12  ;;  %v6031_v33 = vand.u32 4294901760, %v5415_v52  ;;  %v2185_v48 = vand.u32 4294901760, %v2184_v16 }
 0x23a   :  { %v5516_v47 = vpack.c.bf16 %v2290_v6, %v2283_v39  ;;  %v5523_v59 = vpack.c.bf16 %v2178_v55, %v2171_v63  ;;  %v2191_v4 = vsub.f32 %v5413_v3, %v6030_v13  ;;  %v6034_v6 = vand.u32 4294901760, %v5417_v8 }
 0x23b   :  { %v6035_v39 = vand.u32 4294901760, %v5419_v15  ;;  %v5530_v57 = vpack.c.bf16 %v2304_v21, %v2297_v42  ;;  %v2310_v12 = vsub.f32 %v5415_v52, %v6031_v33  ;;  %v6036_v62 = vand.u32 4294901760, %v5421_v56 }
 0x23c   :  { %v2192_v20 = vand.u32 4294901760, %v2191_v4  ;;  %v2317_v63 = vsub.f32 %v5417_v8, %v6034_v6  ;;  %v6038_v21 = vand.u32 4294901760, %v5424_v49  ;;  %v6041_v16 = vand.u32 4294901760, %v5426_v46 }
 0x23d   :  { %v2198_v55 = vsub.f32 %v5419_v15, %v6035_v39  ;;  %v2311_v13 = vand.u32 4294901760, %v2310_v12  ;;  %v2205_v42 = vsub.f32 %v5421_v56, %v6036_v62  ;;  %v6045_v62 = vand.u32 4294901760, %v5430_v10 }
 0x23e   :  { %v5547_v33 = vpack.c.bf16 %v2192_v20, %v2185_v48  ;;  %v2318_v4 = vand.u32 4294901760, %v2317_v63  ;;  %v2324_v39 = vsub.f32 %v5424_v49, %v6038_v21  ;;  %v2331_v12 = vsub.f32 %v5426_v46, %v6041_v16 }
 0x23f   :  { %v2199_v0 = vand.u32 4294901760, %v2198_v55  ;;  %v2206_v6 = vand.u32 4294901760, %v2205_v42  ;;  %v2212_v20 = vsub.f32 %v5428_v5, %v6044_v58  ;;  %v2219_v42 = vsub.f32 %v5430_v10, %v6045_v62 }
 0x240   :  { %v5557_v11 = vpack.c.bf16 %v2318_v4, %v2311_v13  ;;  %v2325_v63 = vand.u32 4294901760, %v2324_v39  ;;  %v2332_v55 = vand.u32 4294901760, %v2331_v12  ;;  %v6051_v16 = vand.u32 4294901760, %v5434_v54 }
 0x241   :  { %v5562_v48 = vpack.c.bf16 %v2206_v6, %v2199_v0  ;;  %v2213_v21 = vand.u32 4294901760, %v2212_v20  ;;  %v6052_v13 = vand.u32 4294901760, %v5438_v25  ;;  %v2220_v35 = vand.u32 4294901760, %v2219_v42 }
 0x242   :  { %v5570_v4 = vpack.c.bf16 %v2332_v55, %v2325_v63  ;;  %v6053_v58 = vand.u32 4294901760, %v5440_v37  ;;  %v2338_v0 = vsub.f32 %v5432_v1, %v6050_v61  ;;  %v2345_v6 = vsub.f32 %v5434_v54, %v6051_v16 }
 0x243   :  { %v2226_v39 = vsub.f32 %v5438_v25, %v6052_v13  ;;  %v3592_v12 = vpack.c.bf16 %v2220_v35, %v2213_v21  ;;  %v3598_v61 = vpack.c.bf16 %v6408_v60, %v6407_v43  ;;  %v3600_v16 = vpack.c.bf16 %v6411_v51, %v6409_v41 }
 0x244   :  { %v2233_v20 = vsub.f32 %v5440_v37, %v6053_v58  ;;  %v2339_v63 = vand.u32 4294901760, %v2338_v0  ;;  %v2346_v55 = vand.u32 4294901760, %v2345_v6  ;;  %v3602_v13 = vpack.c.bf16 %v6431_v17, %v6430_v9 }
 0x245   :  { %v2227_v42 = vand.u32 4294901760, %v2226_v39  ;;  %v3604_v35 = vpack.c.bf16 %v5156_v31, %v5154_v29  ;;  %v3606_v21 = vpack.c.bf16 %v5169_v38, %v5158_v28  ;;  %v3608_v0 = vpack.c.bf16 %v5173_v14, %v5171_v2 }
 0x246   :  { %v2234_v62 = vand.u32 4294901760, %v2233_v20  ;;  %v3594_v45 = vpack.c.bf16 %v2346_v55, %v2339_v63  ;;  %v3612_v6 = vpack.c.bf16 %v5191_v40, %v5189_v19  ;;  %v3614_v39 = vpack.c.bf16 %v5409_v50, %v5407_v24 }
 0x247   :  { %v3616_v20 = vpack.c.bf16 %v5413_v3, %v5411_v26  ;;  %v3618_v63 = vpack.c.bf16 %v5417_v8, %v5415_v52  ;;  %v3620_v55 = vpack.c.bf16 %v5421_v56, %v5419_v15  ;;  %v3624_v58 = vpack.c.bf16 %v5430_v10, %v5428_v5  ;;  %v675_v3 = vld [vmem:[%s5774_s4] sm:$0x3] }
 0x248   :  { %v3596_v22 = vpack.c.bf16 %v2234_v62, %v2227_v42  ;;  %v3610_v62 = vpack.c.bf16 %v5187_v34, %v5175_v36  ;;  %v3622_v42 = vpack.c.bf16 %v5426_v46, %v5424_v49  ;;  %v3626_v40 = vpack.c.bf16 %v5434_v54, %v5432_v1  ;;  %v6432_v8 = vld [vmem:[#allocation75_spill] sm:$0xff] }
 0x249   :  { %v3628_v50 = vpack.c.bf16 %v5440_v37, %v5438_v25  ;;  %v6433_v52 = vsub.s32 0, %v6432_v8  ;;  %v6434_v56 = vsub.s32 1, %v6432_v8 }
 0x24b   :  { %v680_v26 = vrot.slane %v675_v3, %v6433_v52  ;;  %v684_v15 = vrot.slane %v675_v3, %v6434_v56  ;;  %v6440_v52 = vld [vmem:[#allocation61_spill] sm:$0xff] }
 0x24d   :  { %v828_v46 = vadd.f32 %v5307_v32, %v680_v26  ;;  %v830_v10 = vadd.f32 %v5309_v53, %v684_v15 }
 0x2fb   :  { %v1966_v5 = vpop.f32.mrb[0].mxu1 }
 0x2fc   :  { %v3729_v49 = vadd.f32 %v1966_v5, %v828_v46  ;;  %v1968_v54 = vpop.f32.mrb[1].mxu1  ;;  %v6441_v46 = vld [vmem:[#allocation31_spill] sm:$0xff]  ;;  %v6444_v5 = vld [vmem:[#allocation40_spill] sm:$0xff] }
 0x2fd   :  { %v3731_v1 = vadd.f32 %v1968_v54, %v830_v10  ;;  %v6445_v10 = vld [vmem:[#allocation22_spill] sm:$0xff] }
 0x2fe   :  { %v1971_v24 = vmax.f32 %v3729_v49, 0.0  ;;  %v6439_v49 = vld [vmem:[#allocation59_spill] sm:$0xff]  ;;  %v6447_v54 = vld [vmem:[#allocation26_spill] sm:$0xff] }
 0x2ff   :  { %v1972_v37 = vmax.f32 %v3731_v1, 0.0  ;;  %v6446_v1 = vld [vmem:[#allocation23_spill] sm:$0xff] }
 0x300   :  { %v5626_v25 = vand.u32 4294901760, %v1971_v24 }
 0x301   :  { %v5628_v19 = vand.u32 4294901760, %v1972_v37 }
 0x302   :  { %v5631_v34 = vsub.f32 %v1971_v24, %v5626_v25  ;;  %v6437_v24 = vld [vmem:[#allocation54_spill] sm:$0xff] }
 0x303   :  { %v2109_v8 = vsub.f32 %v1972_v37, %v5628_v19  ;;  %v6449_v37 = vand.u32 4294901760, %v6407_v43  ;;  %v6456_v43 = vand.u32 4294901760, %v5154_v29 }
 0x304   :  { %v2116_v3 = vand.u32 4294901760, %v5631_v34 }
 0x305   :  { %v2110_v32 = vand.u32 4294901760, %v2109_v8 }
 0x306   :  { %v2117_v15 = vsub.f32 %v5631_v34, %v2116_v3 }
 0x307   :  { %v2111_v53 = vsub.f32 %v2109_v8, %v2110_v32 }
 0x308   :  { %v2118_v56 = vand.u32 4294901760, %v2117_v15  ;;  %v6481_v15 = vld [vmem:[#allocation38_spill] sm:$0xff] }
 0x309   :  { %v2112_v26 = vand.u32 4294901760, %v2111_v53  ;;  %v6482_v53 = vand.u32 4294901760, %v6481_v15 }
 0x30b   :  { %2113 = vmatprep.mubr.f32.mxu0 %v2112_v26  ;;  %v6483_v26 = vld [vmem:[#allocation39_spill] sm:$0xff] }
 0x30c   :  { %2119 = vmatmul.mubr.f32.vlgmr.msra.gmra.mrb[4].mxu0 %v2118_v56  ;;  %v6484_v56 = vand.u32 4294901760, %v6483_v26 }
 0x30d   :  { %3569 = vmatpush3.bf16.msra.mxu0 %v5471_v44  ;;  %2349 = vmatprep.mubr.f32.mxu0 %v5628_v19  ;;  %v6452_v44 = vand.u32 4294901760, %v6409_v41 }
 0x30e   :  { %3571 = vmatprep.subr.bf16.mxu0 %v5479_v30  ;;  %v6453_v30 = vand.u32 4294901760, %v6411_v51  ;;  %v6458_v51 = vand.u32 4294901760, %v5158_v28 }
 0x311   :  { %3573 = vmatpush3.bf16.msra.mxu0 %v5484_v7  ;;  %v3664_v7 = vpack.c.bf16 %v6453_v30, %v6452_v44  ;;  %v6487_v44 = vld [vmem:[#allocation42_spill] sm:$0xff] }
 0x312   :  { %3575 = vmatprep.subr.bf16.mxu0 %v5497_v23  ;;  %v6454_v23 = vand.u32 4294901760, %v6430_v9  ;;  %v6488_v30 = vand.u32 4294901760, %v6487_v44 }
 0x315   :  { %3577 = vmatpush3.bf16.msra.mxu0 %v5514_v18  ;;  %v6451_v18 = vld [vmem:[#allocation64_spill] sm:$0xff] }
 0x316   :  { %3579 = vmatprep.subr.bf16.mxu0 %v5516_v47 }
 0x319   :  { %3581 = vmatpush3.bf16.msra.mxu0 %v5523_v59 }
 0x31a   :  { %3583 = vmatprep.subr.bf16.mxu0 %v5530_v57  ;;  %v6459_v57 = vand.u32 4294901760, %v5169_v38  ;;  %v6469_v38 = vld [vmem:[#allocation29_spill] sm:$0xff] }
 0x31c   :  { %v3670_v9 = vpack.c.bf16 %v6459_v57, %v6458_v51  ;;  %v6495_v57 = vld [vmem:[#allocation51_spill] sm:$0xff] }
 0x31d   :  { %3585 = vmatpush3.bf16.msra.mxu0 %v5547_v33  ;;  %v6455_v33 = vand.u32 4294901760, %v6431_v17  ;;  %v6460_v17 = vand.u32 4294901760, %v5171_v2 }
 0x31e   :  { %3587 = vmatprep.subr.bf16.mxu0 %v5557_v11  ;;  %v6438_v11 = vld [vmem:[#allocation58_spill] sm:$0xff] }
 0x31f   :  { %v3666_v47 = vpack.c.bf16 %v6455_v33, %v6454_v23  ;;  %v6489_v23 = vld [vmem:[#allocation44_spill] sm:$0xff] }
 0x320   :  { %v6490_v33 = vand.u32 4294901760, %v6489_v23 }
 0x321   :  { %3589 = vmatpush3.bf16.msra.mxu0 %v5562_v48  ;;  %v6462_v48 = vand.u32 4294901760, %v5175_v36 }
 0x322   :  { %3591 = vmatprep.subr.bf16.mxu0 %v5570_v4 }
 0x325   :  { %3593 = vmatpush3.bf16.msra.mxu0 %v3592_v12 }
 0x326   :  { %3595 = vmatprep.subr.bf16.mxu0 %v3594_v45  ;;  %v6436_v45 = vld [vmem:[#allocation50_spill] sm:$0xff] }
 0x329   :  { %3597 = vmatpush3.bf16.msra.mxu0 %v3596_v22  ;;  %v6435_v22 = vld [vmem:[#allocation18_spill] sm:$0xff] }
 0x32a   :  { %3599 = vmatprep.subr.bf16.mxu0 %v3598_v61  ;;  %v6448_v61 = vld [vmem:[#allocation27_spill] sm:$0xff] }
 0x32c   :  { %2351 = vmatmul.mubr.f32.vlgmr.msra.gmra.mrb[6].mxu0 %v5626_v25 }
 0x32d   :  { %3601 = vmatpush3.bf16.msra.mxu0 %v3600_v16  ;;  %2486 = vmatprep.mubr.f32.mxu0 %v2109_v8  ;;  %v6479_v8 = vld [vmem:[#allocation35_spill] sm:$0xff] }
 0x32e   :  { %3603 = vmatprep.subr.bf16.mxu0 %v3602_v13  ;;  %v6463_v13 = vld [vmem:[#allocation62_spill] sm:$0xff] }
 0x32f   :  { %v6464_v29 = vand.u32 4294901760, %v6463_v13 }
 0x331   :  { %3605 = vmatpush3.bf16.msra.mxu0 %v3604_v35  ;;  %v3674_v4 = vpack.c.bf16 %v6464_v29, %v6462_v48  ;;  %v6467_v35 = vld [vmem:[#allocation28_spill] sm:$0xff]  ;;  %v6499_v48 = vld [vmem:[#allocation66_spill] sm:$0xff] }
 0x332   :  { %3607 = vmatprep.subr.bf16.mxu0 %v3606_v21  ;;  %v6468_v28 = vand.u32 4294901760, %v6467_v35  ;;  %v6500_v13 = vand.u32 4294901760, %v6499_v48 }
 0x335   :  { %3609 = vmatpush3.bf16.msra.mxu0 %v3608_v0  ;;  %v6470_v0 = vand.u32 4294901760, %v6469_v38 }
 0x336   :  { %3611 = vmatprep.subr.bf16.mxu0 %v3610_v62  ;;  %v6471_v62 = vld [vmem:[#allocation30_spill] sm:$0xff] }
 0x337   :  { %v6472_v2 = vand.u32 4294901760, %v6471_v62 }
 0x339   :  { %3613 = vmatpush3.bf16.msra.mxu0 %v3612_v6  ;;  %v3678_v6 = vpack.c.bf16 %v6472_v2, %v6470_v0 }
 0x33a   :  { %3615 = vmatprep.subr.bf16.mxu0 %v3614_v39 }
 0x33d   :  { %3617 = vmatpush3.bf16.msra.mxu0 %v3616_v20  ;;  %v6475_v20 = vld [vmem:[#allocation33_spill] sm:$0xff] }
 0x33e   :  { %3619 = vmatprep.subr.bf16.mxu0 %v3618_v63  ;;  %v6476_v36 = vand.u32 4294901760, %v6475_v20 }
 0x341   :  { %3621 = vmatpush3.bf16.msra.mxu0 %v3620_v55  ;;  %v6477_v55 = vld [vmem:[#allocation34_spill] sm:$0xff] }
 0x342   :  { %3623 = vmatprep.subr.bf16.mxu0 %v3622_v42  ;;  %v6478_v42 = vand.u32 4294901760, %v6477_v55 }
 0x345   :  { %3625 = vmatpush3.bf16.msra.mxu0 %v3624_v58  ;;  %v6450_v58 = vand.u32 4294901760, %v6408_v60  ;;  %v6457_v60 = vand.u32 4294901760, %v5156_v31  ;;  %v6465_v31 = vld [vmem:[#allocation63_spill] sm:$0xff] }
 0x346   :  { %3627 = vmatprep.subr.bf16.mxu0 %v3626_v40  ;;  %v6442_v40 = vld [vmem:[#allocation36_spill] sm:$0xff]  ;;  %v6466_v12 = vand.u32 4294901760, %v6465_v31 }
 0x347   :  { %v3662_v59 = vpack.c.bf16 %v6450_v58, %v6449_v37  ;;  %v3668_v41 = vpack.c.bf16 %v6457_v60, %v6456_v43  ;;  %v3684_v37 = vpack.c.bf16 %v6484_v56, %v6482_v53  ;;  %v6485_v58 = vld [vmem:[#allocation41_spill] sm:$0xff] }
 0x348   :  { %v3676_v21 = vpack.c.bf16 %v6468_v28, %v6466_v12 }
 0x349   :  { %3629 = vmatpush3.bf16.msra.mxu0 %v3628_v50  ;;  %v6443_v50 = vld [vmem:[#allocation37_spill] sm:$0xff] }
 0x34a   :  { %3631 = vmatprep.subr.bf16.mxu0 %v6435_v22 }
 0x34c   :  { %2489 = vmatmul.mubr.f32.vlgmr.msra.gmra.mrb[8].mxu0 %v5631_v34  ;;  %v6461_v34 = vand.u32 4294901760, %v5173_v14  ;;  %v6473_v14 = vld [vmem:[#allocation32_spill] sm:$0xff] }
 0x34d   :  { %3633 = vmatpush3.bf16.msra.mxu0 %v6436_v45  ;;  %2593 = vmatprep.mubr.f32.mxu0 %v2110_v32  ;;  %v6474_v39 = vand.u32 4294901760, %v6473_v14 }
 0x34e   :  { %3635 = vmatprep.subr.bf16.mxu0 %v6437_v24  ;;  %v3672_v16 = vpack.c.bf16 %v6461_v34, %v6460_v17  ;;  %v6497_v34 = vld [vmem:[#allocation65_spill] sm:$0xff] }
 0x34f   :  { %v3680_v63 = vpack.c.bf16 %v6476_v36, %v6474_v39 }
 0x351   :  { %3637 = vmatpush3.bf16.msra.mxu0 %v5152_v27 }
 0x352   :  { %3639 = vmatprep.subr.bf16.mxu0 %v6438_v11 }
 0x355   :  { %3641 = vmatpush3.bf16.msra.mxu0 %v6439_v49 }
 0x356   :  { %3643 = vmatprep.subr.bf16.mxu0 %v6440_v52 }
 0x359   :  { %3645 = vmatpush3.bf16.msra.mxu0 %v6441_v46 }
 0x35a   :  { %3647 = vmatprep.subr.bf16.mxu0 %v6442_v40 }
 0x35d   :  { %3649 = vmatpush3.bf16.msra.mxu0 %v6443_v50 }
 0x35e   :  { %3651 = vmatprep.subr.bf16.mxu0 %v6444_v5 }
 0x361   :  { %3653 = vmatpush3.bf16.msra.mxu0 %v6445_v10 }
 0x362   :  { %3655 = vmatprep.subr.bf16.mxu0 %v6446_v1 }
 0x365   :  { %3657 = vmatpush3.bf16.msra.mxu0 %v6447_v54 }
 0x366   :  { %3659 = vmatprep.subr.bf16.mxu0 %v6448_v61 }
 0x369   :  { %3661 = vmatpush3.bf16.msra.mxu0 %v6451_v18 }
 0x36a   :  { %3663 = vmatprep.subr.bf16.mxu0 %v3662_v59  ;;  %v6486_v59 = vand.u32 4294901760, %v6485_v58 }
 0x36c   :  { %2597 = vmatmul.mubr.f32.vlgmr.msra.gmra.mrb[10].mxu0 %v2116_v3  ;;  %v6480_v3 = vand.u32 4294901760, %v6479_v8 }
 0x36d   :  { %3665 = vmatpush3.bf16.msra.mxu0 %v3664_v7  ;;  %2763 = vmatprep.mubr.f32.mxu0 %v5628_v19  ;;  %v3686_v7 = vpack.c.bf16 %v6488_v30, %v6486_v59 }
 0x36e   :  { %3667 = vmatprep.subr.bf16.mxu0 %v3666_v47  ;;  %v3682_v32 = vpack.c.bf16 %v6480_v3, %v6478_v42  ;;  %v6491_v47 = vld [vmem:[#allocation45_spill] sm:$0xff] }
 0x36f   :  { %v6492_v43 = vand.u32 4294901760, %v6491_v47 }
 0x371   :  { %3669 = vmatpush3.bf16.msra.mxu0 %v3668_v41  ;;  %v3688_v60 = vpack.c.bf16 %v6492_v43, %v6490_v33  ;;  %v6493_v41 = vld [vmem:[#allocation47_spill] sm:$0xff] }
 0x372   :  { %3671 = vmatprep.subr.bf16.mxu0 %v3670_v9  ;;  %v6494_v51 = vand.u32 4294901760, %v6493_v41  ;;  %v6496_v9 = vand.u32 4294901760, %v6495_v57 }
 0x374   :  { %v3690_v17 = vpack.c.bf16 %v6496_v9, %v6494_v51 }
 0x375   :  { %3673 = vmatpush3.bf16.msra.mxu0 %v3672_v16  ;;  %v6498_v16 = vand.u32 4294901760, %v6497_v34 }
 0x376   :  { %3675 = vmatprep.subr.bf16.mxu0 %v3674_v4 }
 0x377   :  { %v3692_v29 = vpack.c.bf16 %v6500_v13, %v6498_v16 }
 0x379   :  { %3677 = vmatpush3.bf16.msra.mxu0 %v3676_v21 }
 0x37a   :  { %3679 = vmatprep.subr.bf16.mxu0 %v3678_v6 }
 0x37d   :  { %3681 = vmatpush3.bf16.msra.mxu0 %v3680_v63 }
 0x37e   :  { %3683 = vmatprep.subr.bf16.mxu0 %v3682_v32 }
 0x381   :  { %3685 = vmatpush3.bf16.msra.mxu0 %v3684_v37 }
 0x382   :  { %3687 = vmatprep.subr.bf16.mxu0 %v3686_v7 }
 0x385   :  { %3689 = vmatpush3.bf16.msra.mxu0 %v3688_v60 }
 0x386   :  { %3691 = vmatprep.subr.bf16.mxu0 %v3690_v17 }
 0x389   :  { %3693 = vmatpush3.bf16.msra.mxu0 %v3692_v29 }
 0x38a   :  { %3695 = vmatprep.subr.bf16.mxu0 %v6435_v22 }
 0x38c   :  { %2765 = vmatmul.mubr.f32.vlgmr.msra.gmra.mrb[12].mxu0 %v5626_v25 }
 0x38d   :  { %3697 = vmatpush3.bf16.msra.mxu0 %v6436_v45  ;;  %2867 = vmatprep.mubr.f32.mxu0 %v5628_v19  ;;  %v2891_v45 = vld [vmem:[%s5776_s6] ss:$0 sm:$0xff]  ;;  %s3807_s6 = smov [#allocation5]  }
 0x38e   :  { %3699 = vmatprep.subr.bf16.mxu0 %v6437_v24  ;;  %s2882_s20 = sshll.u32 %s3807_s6, 4  ;;  %s2883_s20 = int_to_ptr.vmem [resolvable:$true] %s2882_s20 }
 0x38f   :  { %s3777_s3 = scalar_lea.vmem %s2883_s20, 128  ;;  %p3782_p9 = scmp.lt.s32.totalorder %s2883_s20, %s2883_s20 }
 0x390   :  { %p3778_p8 = scmp.ne.s32.totalorder %s2883_s20, %s3777_s3  ;;  %p3783_p10 = scmp.lt.s32.totalorder %s3777_s3, %s3777_s3 }
 0x391   :  { %3701 = vmatpush3.bf16.msra.mxu0 %v5152_v27 }
 0x392   :  { %3703 = vmatprep.subr.bf16.mxu0 %v6438_v11  ;;  %p3784_p11 = por %p3783_p10, %p3782_p9 }
 0x394   :  { %p3785_p12 = pnand %p3784_p11, %p3778_p8 }
 0x395   :  { %3705 = vmatpush3.bf16.msra.mxu0 %v6439_v49 }
 0x396   :  { %3707 = vmatprep.subr.bf16.mxu0 %v6440_v52 }
 0x399   :  { %3709 = vmatpush3.bf16.msra.mxu0 %v6441_v46 }
 0x39a   :  { %3711 = vmatprep.subr.bf16.mxu0 %v6442_v40 }
 0x39d   :  { %3713 = vmatpush3.bf16.msra.mxu0 %v6443_v50 }
 0x39e   :  { %3715 = vmatprep.subr.bf16.mxu0 %v6444_v5 }
 0x3a1   :  { %3717 = vmatpush3.bf16.msra.mxu0 %v6445_v10 }
 0x3a2   :  { %3719 = vmatprep.subr.bf16.mxu0 %v6446_v1 }
 0x3a5   :  { %3721 = vmatpush3.bf16.msra.mxu0 %v6447_v54 }
 0x3a6   :  { %3723 = vmatprep.subr.bf16.mxu0 %v6448_v61 }
 0x3a9   :  { %3725 = vmatpush3.bf16.msra.mxu0 %v6451_v18 }
 0x3ac   :  { %2869 = vmatmul.mubr.f32.vlgmr.msra.gmra.mrb[14].mxu0 %v5626_v25 }
 0x3df   :  { %v2924_v27 = vpop.f32.mrb[4].mxu0 }
 0x3e0   :  { %v2925_v19 = vpop.f32.mrb[5].mxu0 }
 0x3e1   :  { %v2926_v22 = vadd.f32 %v2925_v19, %v2924_v27 }
 0x3e3   :  { %v2121_v49 = vadd.f32 %v2926_v22, %v2891_v45 }
 0x3ff   :  { %v2959_v24 = vpop.f32.mrb[6].mxu0 }
 0x400   :  { %v2960_v11 = vpop.f32.mrb[7].mxu0 }
 0x401   :  { %v2961_v52 = vadd.f32 %v2960_v11, %v2959_v24 }
 0x403   :  { %v2353_v46 = vadd.f32 %v2961_v52, %v2121_v49 }
 0x41f   :  { %v2994_v40 = vpop.f32.mrb[8].mxu0 }
 0x420   :  { %v2995_v50 = vpop.f32.mrb[9].mxu0 }
 0x421   :  { %v2996_v5 = vadd.f32 %v2995_v50, %v2994_v40 }
 0x423   :  { %v2491_v10 = vadd.f32 %v2996_v5, %v2353_v46 }
 0x43f   :  { %v3029_v1 = vpop.f32.mrb[10].mxu0 }
 0x440   :  { %v3030_v54 = vpop.f32.mrb[11].mxu0 }
 0x441   :  { %v3031_v61 = vadd.f32 %v3030_v54, %v3029_v1 }
 0x443   :  { %v2599_v25 = vadd.f32 %v3031_v61, %v2491_v10 }
 0x45f   :  { %v3064_v18 = vpop.f32.mrb[12].mxu0 }
 0x460   :  { %v3065_v4 = vpop.f32.mrb[13].mxu0 }
 0x461   :  { %v3066_v31 = vadd.f32 %v3065_v4, %v3064_v18 }
 0x463   :  { %v2767_v12 = vadd.f32 %v3066_v31, %v2599_v25 }
 0x47f   :  { %v3099_v35 = vpop.f32.mrb[14].mxu0 }
 0x480   :  { %v3100_v28 = vpop.f32.mrb[15].mxu0 }
 0x481   :  { %v3101_v21 = vadd.f32 %v3100_v28, %v3099_v35 }
 0x483   :  { %v2871_v38 = vadd.f32 %v3101_v21, %v2767_v12 }
 0x485   :  { %2875 = vst.msk [vmem:[#allocation5] sm:$0xff] %vm2874_vm1, %v2871_v38 }
 0x486   :  { %3788 = shalt.err (!%p3785_p12)
}
 0x487   :  { %s3789_s23 = scalar_lea.hbm %s5777_s7, 128 }
 0x488   :  { %p3790_p13 = scmp.ne.s32.totalorder %s5777_s7, %s3789_s23  ;;  %p3793_p0 = scmp.lt.u32.totalorder %s3789_s23, %s5777_s7 }
 0x48a   :  { %p3795_p1 = pnand %p3793_p0, %p3790_p13 }
 0x48c   :  { %3798 = shalt.err (!%p3795_p1)
}
 0x48d   :  { %2885 = dma.vmem_to_hbm [thread:$0]  %s2883_s20, 128, %s5777_s7, [#allocation4]  }
 0x48e   :  { %3801 = dma.done.wait [#allocation4], 128  }
 0x48f   :  { %3802 = vsyncadd [#allocation4], 4294967168 }
 0x490   :  { %2889 = vsyncpa [#allocation3], 1 }
 0x491   :  { %2890 = vsyncpa [#allocation4], 1 }

</bundles_post_ra>
